<compile_context>
chip_gen: v5e
topology: v5e:2x2
jax: 0.10.0
libtpu: 0.0.40
codegen_flags: <defaults>
</compile_context>

<pallas_src>
import numpy as np

import jax
import jax.numpy as jnp
from jax import lax
from jax.experimental import pallas as pl
from jax.experimental.pallas import tpu as pltpu


def convolutional_encoder_forward(x, w1, b1, w3, b3, w5, b5, wd, bd,
                                  gamma, beta, *, eps=1e-5, block_n=128):
    """Matches ConvolutionalEncoder.forward (dropout in eval mode = identity)."""
    n, c_in, h, w = x.shape
    c_out = w1.shape[0]
    hw = h * w

    # --- padding exactly as the PyTorch forward computes it -----------------
    pad3 = max(0, (3 - h) // 2)
    pad5 = max(0, (5 - h) // 2)
    padd = max(0, (5 - h) // 2)

    # The reference module only type-checks when the 3/5/dilated branches emit
    # 1x1 maps that broadcast against conv1's HxW map (i.e. H = W in {1, 3}).
    def _branch_out(k, dil, pad):
        hp, wp = h + 2 * pad, w + 2 * pad
        return hp - dil * (k - 1), wp - dil * (k - 1)

    for k_, d_, p_ in ((3, 1, pad3), (5, 1, pad5), (3, 2, padd)):
        if _branch_out(k_, d_, p_) != (1, 1):
            raise ValueError(
                "ConvolutionalEncoder.forward only type-checks for H = W in "
                "{1, 3}; the 3/5/dilated branches must produce 1x1 maps.")

    # --- one-off parameter repacking -----------------------------------------
    # Fold replicate padding into each kxk kernel: every padded tap position
    # maps (via edge clamping) onto one of the h*w original pixels, so the
    # branch becomes a plain weighted sum over the original image.
    def fold(wk, k, dil, pad):
        m = np.zeros((k * k, hw), np.float32)
        for kh in range(k):
            rh = min(max(kh * dil - pad, 0), h - 1)
            for kw in range(k):
                rw = min(max(kw * dil - pad, 0), w - 1)
                m[kh * k + kw, rh * w + rw] = 1.0
        return jnp.dot(wk.reshape(c_out, c_in, k * k).astype(jnp.float32),
                       jnp.asarray(m))                         # (c_out, c_in, hw)

    wg = fold(w3, 3, 1, pad3) + fold(w5, 5, 1, pad5) + fold(wd, 3, 2, padd)

    w1_flat = w1.reshape(c_out, c_in).astype(jnp.float32)        # (c_out, c_in)
    wg_flat = jnp.transpose(wg, (0, 2, 1)).reshape(c_out, hw * c_in)  # col = p*c_in+ci
    bias_sum = (b1 + b3 + b5 + bd).astype(jnp.float32).reshape(c_out, 1)
    params = jnp.concatenate(
        [w1_flat, wg_flat, bias_sum,
         gamma.astype(jnp.float32).reshape(c_out, 1),
         beta.astype(jnp.float32).reshape(c_out, 1)], axis=1)    # (c_out, 43)
    n_cols = c_in * (hw + 1) + 3
    b_col = c_in * (hw + 1)                 # column of the folded bias

    # --- activation layout: batch on the 128-lane axis -----------------------
    x_t = jnp.transpose(x.reshape(n, c_in, hw), (2, 1, 0))       # (hw, c_in, n)
    if n >= block_n:
        nb = block_n
        n_pad = pl.cdiv(n, nb) * nb
    else:
        nb = n                               # full-dim block (lane-sparse only
        n_pad = n                            # when the whole batch is tiny)
    if n_pad != n:
        x_t = jnp.pad(x_t, ((0, 0), (0, 0), (0, n_pad - n)))     # zero pad batch

    def kernel(x_ref, p_ref, o_ref):
        prm = p_ref[...].astype(jnp.float32)        # (c_out, 43) — one vreg tile
        yg = None                                   # shared 1x1-branch accumulator
        y1 = [None] * hw                            # per-position conv1 accumulators
        for p in range(hw):
            xs = x_ref[p].astype(jnp.float32)       # (c_in, nb), loaded once
            acc = None
            for ci in range(c_in):
                row = xs[ci:ci + 1, :]              # (1, nb)
                t1 = prm[:, ci:ci + 1] * row        # conv1 broadcast MAC (VPU)
                col = c_in + p * c_in + ci
                tg = prm[:, col:col + 1] * row      # folded 3/5/dilated MAC (VPU)
                acc = t1 if acc is None else acc + t1
                yg = tg if yg is None else yg + tg
            y1[p] = acc
        yg = yg + prm[:, b_col:b_col + 1]           # all four biases, added once
        gam = prm[:, b_col + 1:b_col + 2]           # (c_out, 1)
        bet = prm[:, b_col + 2:b_col + 3]           # (c_out, 1)
        for p in range(hw):
            y = y1[p] + yg                          # (c_out, nb)
            # LayerNorm over channels (sublane axis), per (position, image).
            mu = jnp.mean(y, axis=0, keepdims=True)
            d = y - mu
            var = jnp.mean(d * d, axis=0, keepdims=True)
            yn = d * lax.rsqrt(var + eps) * gam + bet
            # Dropout(p=0.1) is the identity in eval mode.
            # TODO(synk): training-mode stochastic dropout masking not implemented.
            o_ref[p] = yn.astype(o_ref.dtype)       # lane-dense unmasked store

    out = pl.pallas_call(
        kernel,
        out_shape=jax.ShapeDtypeStruct((hw, c_out, n_pad), x.dtype),
        grid=(n_pad // nb,),
        in_specs=[
            pl.BlockSpec((hw, c_in, nb), lambda i: (0, 0, i)),
            pl.BlockSpec((c_out, n_cols), lambda i: (0, 0)),
        ],
        out_specs=pl.BlockSpec((hw, c_out, nb), lambda i: (0, 0, i)),
        compiler_params=pltpu.CompilerParams(
            dimension_semantics=("parallel",)),
    )(x_t, params)

    out = out[:, :, :n]                                          # drop batch pad
    # (hw, c_out, n) -> (n, c_out, h, w): wrapper-side layout plumbing only.
    return jnp.transpose(out, (2, 1, 0)).reshape(n, c_out, h, w)


def _reference_forward(x, w1, b1, w3, b3, w5, b5, wd, bd, gamma, beta, eps=1e-5):
    """Plain-JAX mirror of the PyTorch forward (dropout in eval mode)."""
    h = x.shape[2]

    def rep_pad(a, p):
        if p == 0:
            return a
        return jnp.pad(a, ((0, 0), (0, 0), (p, p), (p, p)), mode="edge")

    def conv(a, wt, b, dil):
        y = lax.conv_general_dilated(
            a, wt, window_strides=(1, 1), padding="VALID",
            rhs_dilation=(dil, dil),
            dimension_numbers=("NCHW", "OIHW", "NCHW"))
        return y + b[None, :, None, None]

    pad3 = max(0, (3 - h) // 2)
    pad5 = max(0, (5 - h) // 2)
    padd = max(0, (5 - h) // 2)
    s = (conv(x, w1, b1, 1)
         + conv(rep_pad(x, pad3), w3, b3, 1)
         + conv(rep_pad(x, pad5), w5, b5, 1)
         + conv(rep_pad(x, padd), wd, bd, 2))
    s = jnp.transpose(s, (0, 2, 3, 1))
    mu = jnp.mean(s, axis=-1, keepdims=True)
    var = jnp.mean((s - mu) ** 2, axis=-1, keepdims=True)
    s = (s - mu) / jnp.sqrt(var + eps) * gamma + beta
    return jnp.transpose(s, (0, 3, 1, 2))


if __name__ == "__main__":
    N, C_IN, C_OUT = 256, 4, 8      # N = 256 -> grid of 2 lane-dense steps
    H = W = 3                       # the module only type-checks for H = W in {1, 3}

    key = jax.random.PRNGKey(0)
    keys = jax.random.split(key, 11)
    x = jax.random.normal(keys[0], (N, C_IN, H, W), jnp.float32)
    w1 = 0.2 * jax.random.normal(keys[1], (C_OUT, C_IN, 1, 1), jnp.float32)
    b1 = 0.1 * jax.random.normal(keys[2], (C_OUT,), jnp.float32)
    w3 = 0.2 * jax.random.normal(keys[3], (C_OUT, C_IN, 3, 3), jnp.float32)
    b3 = 0.1 * jax.random.normal(keys[4], (C_OUT,), jnp.float32)
    w5 = 0.2 * jax.random.normal(keys[5], (C_OUT, C_IN, 5, 5), jnp.float32)
    b5 = 0.1 * jax.random.normal(keys[6], (C_OUT,), jnp.float32)
    wd = 0.2 * jax.random.normal(keys[7], (C_OUT, C_IN, 3, 3), jnp.float32)
    bd = 0.1 * jax.random.normal(keys[8], (C_OUT,), jnp.float32)
    gamma = 1.0 + 0.1 * jax.random.normal(keys[9], (C_OUT,), jnp.float32)
    beta = 0.1 * jax.random.normal(keys[10], (C_OUT,), jnp.float32)

    y = convolutional_encoder_forward(x, w1, b1, w3, b3, w5, b5, wd, bd,
                                      gamma, beta)
    y = jax.block_until_ready(y)

    ref = _reference_forward(x, w1, b1, w3, b3, w5, b5, wd, bd, gamma, beta)
    assert y.shape == (N, C_OUT, H, W), y.shape
    max_err = float(jnp.max(jnp.abs(y - ref)))
    assert jnp.allclose(y, ref, atol=1e-3, rtol=1e-3), f"max_err={max_err}"

    # Small-batch path (block = whole batch, no padding, single grid step).
    y_s = convolutional_encoder_forward(x[:6], w1, b1, w3, b3, w5, b5, wd, bd,
                                        gamma, beta)
    y_s = jax.block_until_ready(y_s)
    max_err_s = float(jnp.max(jnp.abs(y_s - ref[:6])))
    assert jnp.allclose(y_s, ref[:6], atol=1e-3, rtol=1e-3), f"max_err={max_err_s}"

    print("KERNEL_OK")
</pallas_src>

<mosaic_0001>
module attributes {stable_mosaic.version = 11 : i64} {
  func.func @kernel(%arg0: i32, %arg1: memref<9x4x128xf32, #tpu.memory_space<vmem>>, %arg2: memref<8x43xf32, #tpu.memory_space<vmem>>, %arg3: memref<9x8x128xf32, #tpu.memory_space<vmem>>) attributes {dimension_semantics = [#tpu.dimension_semantics<parallel>], iteration_bounds = array<i64: 2>, scalar_prefetch = 0 : i64, scratch_operands = 0 : i64, tpu.core_type = #tpu.core_type<tc>, window_params = [{transform_indices = @transform_0, window_bounds = array<i64: 9, 4, 128>}, {pipeline_mode = #tpu.pipeline_mode<synchronous>, transform_indices = @transform_1, window_bounds = array<i64: 8, 43>}, {transform_indices = @transform_2, window_bounds = array<i64: 9, 8, 128>}]} {
    %c0 = arith.constant 0 : index
    %c0_0 = arith.constant 0 : index
    %0 = vector.load %arg2[%c0, %c0_0] : memref<8x43xf32, #tpu.memory_space<vmem>>, vector<8x43xf32>
    %c0_1 = arith.constant 0 : index
    %c0_2 = arith.constant 0 : index
    %c0_3 = arith.constant 0 : index
    %1 = vector.load %arg1[%c0_1, %c0_2, %c0_3] : memref<9x4x128xf32, #tpu.memory_space<vmem>>, vector<1x4x128xf32>
    %2 = vector.shape_cast %1 : vector<1x4x128xf32> to vector<4x128xf32>
    %3 = vector.extract_strided_slice %2 {offsets = [0, 0], sizes = [1, 128], strides = [1, 1]} : vector<4x128xf32> to vector<1x128xf32>
    %4 = vector.extract_strided_slice %0 {offsets = [0, 0], sizes = [8, 1], strides = [1, 1]} : vector<8x43xf32> to vector<8x1xf32>
    %5 = vector.broadcast %4 : vector<8x1xf32> to vector<8x128xf32>
    %6 = vector.broadcast %3 : vector<1x128xf32> to vector<8x128xf32>
    %7 = arith.mulf %5, %6 : vector<8x128xf32>
    %8 = vector.extract_strided_slice %0 {offsets = [0, 4], sizes = [8, 1], strides = [1, 1]} : vector<8x43xf32> to vector<8x1xf32>
    %9 = vector.broadcast %8 : vector<8x1xf32> to vector<8x128xf32>
    %10 = vector.broadcast %3 : vector<1x128xf32> to vector<8x128xf32>
    %11 = arith.mulf %9, %10 : vector<8x128xf32>
    %12 = vector.extract_strided_slice %2 {offsets = [1, 0], sizes = [1, 128], strides = [1, 1]} : vector<4x128xf32> to vector<1x128xf32>
    %13 = vector.extract_strided_slice %0 {offsets = [0, 1], sizes = [8, 1], strides = [1, 1]} : vector<8x43xf32> to vector<8x1xf32>
    %14 = vector.broadcast %13 : vector<8x1xf32> to vector<8x128xf32>
    %15 = vector.broadcast %12 : vector<1x128xf32> to vector<8x128xf32>
    %16 = arith.mulf %14, %15 : vector<8x128xf32>
    %17 = vector.extract_strided_slice %0 {offsets = [0, 5], sizes = [8, 1], strides = [1, 1]} : vector<8x43xf32> to vector<8x1xf32>
    %18 = vector.broadcast %17 : vector<8x1xf32> to vector<8x128xf32>
    %19 = vector.broadcast %12 : vector<1x128xf32> to vector<8x128xf32>
    %20 = arith.mulf %18, %19 : vector<8x128xf32>
    %21 = arith.addf %7, %16 : vector<8x128xf32>
    %22 = arith.addf %11, %20 : vector<8x128xf32>
    %23 = vector.extract_strided_slice %2 {offsets = [2, 0], sizes = [1, 128], strides = [1, 1]} : vector<4x128xf32> to vector<1x128xf32>
    %24 = vector.extract_strided_slice %0 {offsets = [0, 2], sizes = [8, 1], strides = [1, 1]} : vector<8x43xf32> to vector<8x1xf32>
    %25 = vector.broadcast %24 : vector<8x1xf32> to vector<8x128xf32>
    %26 = vector.broadcast %23 : vector<1x128xf32> to vector<8x128xf32>
    %27 = arith.mulf %25, %26 : vector<8x128xf32>
    %28 = vector.extract_strided_slice %0 {offsets = [0, 6], sizes = [8, 1], strides = [1, 1]} : vector<8x43xf32> to vector<8x1xf32>
    %29 = vector.broadcast %28 : vector<8x1xf32> to vector<8x128xf32>
    %30 = vector.broadcast %23 : vector<1x128xf32> to vector<8x128xf32>
    %31 = arith.mulf %29, %30 : vector<8x128xf32>
    %32 = arith.addf %21, %27 : vector<8x128xf32>
    %33 = arith.addf %22, %31 : vector<8x128xf32>
    %34 = vector.extract_strided_slice %2 {offsets = [3, 0], sizes = [1, 128], strides = [1, 1]} : vector<4x128xf32> to vector<1x128xf32>
    %35 = vector.extract_strided_slice %0 {offsets = [0, 3], sizes = [8, 1], strides = [1, 1]} : vector<8x43xf32> to vector<8x1xf32>
    %36 = vector.broadcast %35 : vector<8x1xf32> to vector<8x128xf32>
    %37 = vector.broadcast %34 : vector<1x128xf32> to vector<8x128xf32>
    %38 = arith.mulf %36, %37 : vector<8x128xf32>
    %39 = vector.extract_strided_slice %0 {offsets = [0, 7], sizes = [8, 1], strides = [1, 1]} : vector<8x43xf32> to vector<8x1xf32>
    %40 = vector.broadcast %39 : vector<8x1xf32> to vector<8x128xf32>
    %41 = vector.broadcast %34 : vector<1x128xf32> to vector<8x128xf32>
    %42 = arith.mulf %40, %41 : vector<8x128xf32>
    %43 = arith.addf %32, %38 : vector<8x128xf32>
    %44 = arith.addf %33, %42 : vector<8x128xf32>
    %c1 = arith.constant 1 : index
    %c0_4 = arith.constant 0 : index
    %c0_5 = arith.constant 0 : index
    %45 = vector.load %arg1[%c1, %c0_4, %c0_5] : memref<9x4x128xf32, #tpu.memory_space<vmem>>, vector<1x4x128xf32>
    %46 = vector.shape_cast %45 : vector<1x4x128xf32> to vector<4x128xf32>
    %47 = vector.extract_strided_slice %46 {offsets = [0, 0], sizes = [1, 128], strides = [1, 1]} : vector<4x128xf32> to vector<1x128xf32>
    %48 = vector.extract_strided_slice %0 {offsets = [0, 0], sizes = [8, 1], strides = [1, 1]} : vector<8x43xf32> to vector<8x1xf32>
    %49 = vector.broadcast %48 : vector<8x1xf32> to vector<8x128xf32>
    %50 = vector.broadcast %47 : vector<1x128xf32> to vector<8x128xf32>
    %51 = arith.mulf %49, %50 : vector<8x128xf32>
    %52 = vector.extract_strided_slice %0 {offsets = [0, 8], sizes = [8, 1], strides = [1, 1]} : vector<8x43xf32> to vector<8x1xf32>
    %53 = vector.broadcast %52 : vector<8x1xf32> to vector<8x128xf32>
    %54 = vector.broadcast %47 : vector<1x128xf32> to vector<8x128xf32>
    %55 = arith.mulf %53, %54 : vector<8x128xf32>
    %56 = arith.addf %44, %55 : vector<8x128xf32>
    %57 = vector.extract_strided_slice %46 {offsets = [1, 0], sizes = [1, 128], strides = [1, 1]} : vector<4x128xf32> to vector<1x128xf32>
    %58 = vector.extract_strided_slice %0 {offsets = [0, 1], sizes = [8, 1], strides = [1, 1]} : vector<8x43xf32> to vector<8x1xf32>
    %59 = vector.broadcast %58 : vector<8x1xf32> to vector<8x128xf32>
    %60 = vector.broadcast %57 : vector<1x128xf32> to vector<8x128xf32>
    %61 = arith.mulf %59, %60 : vector<8x128xf32>
    %62 = vector.extract_strided_slice %0 {offsets = [0, 9], sizes = [8, 1], strides = [1, 1]} : vector<8x43xf32> to vector<8x1xf32>
    %63 = vector.broadcast %62 : vector<8x1xf32> to vector<8x128xf32>
    %64 = vector.broadcast %57 : vector<1x128xf32> to vector<8x128xf32>
    %65 = arith.mulf %63, %64 : vector<8x128xf32>
    %66 = arith.addf %51, %61 : vector<8x128xf32>
    %67 = arith.addf %56, %65 : vector<8x128xf32>
    %68 = vector.extract_strided_slice %46 {offsets = [2, 0], sizes = [1, 128], strides = [1, 1]} : vector<4x128xf32> to vector<1x128xf32>
    %69 = vector.extract_strided_slice %0 {offsets = [0, 2], sizes = [8, 1], strides = [1, 1]} : vector<8x43xf32> to vector<8x1xf32>
    %70 = vector.broadcast %69 : vector<8x1xf32> to vector<8x128xf32>
    %71 = vector.broadcast %68 : vector<1x128xf32> to vector<8x128xf32>
    %72 = arith.mulf %70, %71 : vector<8x128xf32>
    %73 = vector.extract_strided_slice %0 {offsets = [0, 10], sizes = [8, 1], strides = [1, 1]} : vector<8x43xf32> to vector<8x1xf32>
    %74 = vector.broadcast %73 : vector<8x1xf32> to vector<8x128xf32>
    %75 = vector.broadcast %68 : vector<1x128xf32> to vector<8x128xf32>
    %76 = arith.mulf %74, %75 : vector<8x128xf32>
    %77 = arith.addf %66, %72 : vector<8x128xf32>
    %78 = arith.addf %67, %76 : vector<8x128xf32>
    %79 = vector.extract_strided_slice %46 {offsets = [3, 0], sizes = [1, 128], strides = [1, 1]} : vector<4x128xf32> to vector<1x128xf32>
    %80 = vector.extract_strided_slice %0 {offsets = [0, 3], sizes = [8, 1], strides = [1, 1]} : vector<8x43xf32> to vector<8x1xf32>
    %81 = vector.broadcast %80 : vector<8x1xf32> to vector<8x128xf32>
    %82 = vector.broadcast %79 : vector<1x128xf32> to vector<8x128xf32>
    %83 = arith.mulf %81, %82 : vector<8x128xf32>
    %84 = vector.extract_strided_slice %0 {offsets = [0, 11], sizes = [8, 1], strides = [1, 1]} : vector<8x43xf32> to vector<8x1xf32>
    %85 = vector.broadcast %84 : vector<8x1xf32> to vector<8x128xf32>
    %86 = vector.broadcast %79 : vector<1x128xf32> to vector<8x128xf32>
    %87 = arith.mulf %85, %86 : vector<8x128xf32>
    %88 = arith.addf %77, %83 : vector<8x128xf32>
    %89 = arith.addf %78, %87 : vector<8x128xf32>
    %c2 = arith.constant 2 : index
    %c0_6 = arith.constant 0 : index
    %c0_7 = arith.constant 0 : index
    %90 = vector.load %arg1[%c2, %c0_6, %c0_7] : memref<9x4x128xf32, #tpu.memory_space<vmem>>, vector<1x4x128xf32>
    %91 = vector.shape_cast %90 : vector<1x4x128xf32> to vector<4x128xf32>
    %92 = vector.extract_strided_slice %91 {offsets = [0, 0], sizes = [1, 128], strides = [1, 1]} : vector<4x128xf32> to vector<1x128xf32>
    %93 = vector.extract_strided_slice %0 {offsets = [0, 0], sizes = [8, 1], strides = [1, 1]} : vector<8x43xf32> to vector<8x1xf32>
    %94 = vector.broadcast %93 : vector<8x1xf32> to vector<8x128xf32>
    %95 = vector.broadcast %92 : vector<1x128xf32> to vector<8x128xf32>
    %96 = arith.mulf %94, %95 : vector<8x128xf32>
    %97 = vector.extract_strided_slice %0 {offsets = [0, 12], sizes = [8, 1], strides = [1, 1]} : vector<8x43xf32> to vector<8x1xf32>
    %98 = vector.broadcast %97 : vector<8x1xf32> to vector<8x128xf32>
    %99 = vector.broadcast %92 : vector<1x128xf32> to vector<8x128xf32>
    %100 = arith.mulf %98, %99 : vector<8x128xf32>
    %101 = arith.addf %89, %100 : vector<8x128xf32>
    %102 = vector.extract_strided_slice %91 {offsets = [1, 0], sizes = [1, 128], strides = [1, 1]} : vector<4x128xf32> to vector<1x128xf32>
    %103 = vector.extract_strided_slice %0 {offsets = [0, 1], sizes = [8, 1], strides = [1, 1]} : vector<8x43xf32> to vector<8x1xf32>
    %104 = vector.broadcast %103 : vector<8x1xf32> to vector<8x128xf32>
    %105 = vector.broadcast %102 : vector<1x128xf32> to vector<8x128xf32>
    %106 = arith.mulf %104, %105 : vector<8x128xf32>
    %107 = vector.extract_strided_slice %0 {offsets = [0, 13], sizes = [8, 1], strides = [1, 1]} : vector<8x43xf32> to vector<8x1xf32>
    %108 = vector.broadcast %107 : vector<8x1xf32> to vector<8x128xf32>
    %109 = vector.broadcast %102 : vector<1x128xf32> to vector<8x128xf32>
    %110 = arith.mulf %108, %109 : vector<8x128xf32>
    %111 = arith.addf %96, %106 : vector<8x128xf32>
    %112 = arith.addf %101, %110 : vector<8x128xf32>
    %113 = vector.extract_strided_slice %91 {offsets = [2, 0], sizes = [1, 128], strides = [1, 1]} : vector<4x128xf32> to vector<1x128xf32>
    %114 = vector.extract_strided_slice %0 {offsets = [0, 2], sizes = [8, 1], strides = [1, 1]} : vector<8x43xf32> to vector<8x1xf32>
    %115 = vector.broadcast %114 : vector<8x1xf32> to vector<8x128xf32>
    %116 = vector.broadcast %113 : vector<1x128xf32> to vector<8x128xf32>
    %117 = arith.mulf %115, %116 : vector<8x128xf32>
    %118 = vector.extract_strided_slice %0 {offsets = [0, 14], sizes = [8, 1], strides = [1, 1]} : vector<8x43xf32> to vector<8x1xf32>
    %119 = vector.broadcast %118 : vector<8x1xf32> to vector<8x128xf32>
    %120 = vector.broadcast %113 : vector<1x128xf32> to vector<8x128xf32>
    %121 = arith.mulf %119, %120 : vector<8x128xf32>
    %122 = arith.addf %111, %117 : vector<8x128xf32>
    %123 = arith.addf %112, %121 : vector<8x128xf32>
    %124 = vector.extract_strided_slice %91 {offsets = [3, 0], sizes = [1, 128], strides = [1, 1]} : vector<4x128xf32> to vector<1x128xf32>
    %125 = vector.extract_strided_slice %0 {offsets = [0, 3], sizes = [8, 1], strides = [1, 1]} : vector<8x43xf32> to vector<8x1xf32>
    %126 = vector.broadcast %125 : vector<8x1xf32> to vector<8x128xf32>
    %127 = vector.broadcast %124 : vector<1x128xf32> to vector<8x128xf32>
    %128 = arith.mulf %126, %127 : vector<8x128xf32>
    %129 = vector.extract_strided_slice %0 {offsets = [0, 15], sizes = [8, 1], strides = [1, 1]} : vector<8x43xf32> to vector<8x1xf32>
    %130 = vector.broadcast %129 : vector<8x1xf32> to vector<8x128xf32>
    %131 = vector.broadcast %124 : vector<1x128xf32> to vector<8x128xf32>
    %132 = arith.mulf %130, %131 : vector<8x128xf32>
    %133 = arith.addf %122, %128 : vector<8x128xf32>
    %134 = arith.addf %123, %132 : vector<8x128xf32>
    %c3 = arith.constant 3 : index
    %c0_8 = arith.constant 0 : index
    %c0_9 = arith.constant 0 : index
    %135 = vector.load %arg1[%c3, %c0_8, %c0_9] : memref<9x4x128xf32, #tpu.memory_space<vmem>>, vector<1x4x128xf32>
    %136 = vector.shape_cast %135 : vector<1x4x128xf32> to vector<4x128xf32>
    %137 = vector.extract_strided_slice %136 {offsets = [0, 0], sizes = [1, 128], strides = [1, 1]} : vector<4x128xf32> to vector<1x128xf32>
    %138 = vector.extract_strided_slice %0 {offsets = [0, 0], sizes = [8, 1], strides = [1, 1]} : vector<8x43xf32> to vector<8x1xf32>
    %139 = vector.broadcast %138 : vector<8x1xf32> to vector<8x128xf32>
    %140 = vector.broadcast %137 : vector<1x128xf32> to vector<8x128xf32>
    %141 = arith.mulf %139, %140 : vector<8x128xf32>
    %142 = vector.extract_strided_slice %0 {offsets = [0, 16], sizes = [8, 1], strides = [1, 1]} : vector<8x43xf32> to vector<8x1xf32>
    %143 = vector.broadcast %142 : vector<8x1xf32> to vector<8x128xf32>
    %144 = vector.broadcast %137 : vector<1x128xf32> to vector<8x128xf32>
    %145 = arith.mulf %143, %144 : vector<8x128xf32>
    %146 = arith.addf %134, %145 : vector<8x128xf32>
    %147 = vector.extract_strided_slice %136 {offsets = [1, 0], sizes = [1, 128], strides = [1, 1]} : vector<4x128xf32> to vector<1x128xf32>
    %148 = vector.extract_strided_slice %0 {offsets = [0, 1], sizes = [8, 1], strides = [1, 1]} : vector<8x43xf32> to vector<8x1xf32>
    %149 = vector.broadcast %148 : vector<8x1xf32> to vector<8x128xf32>
    %150 = vector.broadcast %147 : vector<1x128xf32> to vector<8x128xf32>
    %151 = arith.mulf %149, %150 : vector<8x128xf32>
    %152 = vector.extract_strided_slice %0 {offsets = [0, 17], sizes = [8, 1], strides = [1, 1]} : vector<8x43xf32> to vector<8x1xf32>
    %153 = vector.broadcast %152 : vector<8x1xf32> to vector<8x128xf32>
    %154 = vector.broadcast %147 : vector<1x128xf32> to vector<8x128xf32>
    %155 = arith.mulf %153, %154 : vector<8x128xf32>
    %156 = arith.addf %141, %151 : vector<8x128xf32>
    %157 = arith.addf %146, %155 : vector<8x128xf32>
    %158 = vector.extract_strided_slice %136 {offsets = [2, 0], sizes = [1, 128], strides = [1, 1]} : vector<4x128xf32> to vector<1x128xf32>
    %159 = vector.extract_strided_slice %0 {offsets = [0, 2], sizes = [8, 1], strides = [1, 1]} : vector<8x43xf32> to vector<8x1xf32>
    %160 = vector.broadcast %159 : vector<8x1xf32> to vector<8x128xf32>
    %161 = vector.broadcast %158 : vector<1x128xf32> to vector<8x128xf32>
    %162 = arith.mulf %160, %161 : vector<8x128xf32>
    %163 = vector.extract_strided_slice %0 {offsets = [0, 18], sizes = [8, 1], strides = [1, 1]} : vector<8x43xf32> to vector<8x1xf32>
    %164 = vector.broadcast %163 : vector<8x1xf32> to vector<8x128xf32>
    %165 = vector.broadcast %158 : vector<1x128xf32> to vector<8x128xf32>
    %166 = arith.mulf %164, %165 : vector<8x128xf32>
    %167 = arith.addf %156, %162 : vector<8x128xf32>
    %168 = arith.addf %157, %166 : vector<8x128xf32>
    %169 = vector.extract_strided_slice %136 {offsets = [3, 0], sizes = [1, 128], strides = [1, 1]} : vector<4x128xf32> to vector<1x128xf32>
    %170 = vector.extract_strided_slice %0 {offsets = [0, 3], sizes = [8, 1], strides = [1, 1]} : vector<8x43xf32> to vector<8x1xf32>
    %171 = vector.broadcast %170 : vector<8x1xf32> to vector<8x128xf32>
    %172 = vector.broadcast %169 : vector<1x128xf32> to vector<8x128xf32>
    %173 = arith.mulf %171, %172 : vector<8x128xf32>
    %174 = vector.extract_strided_slice %0 {offsets = [0, 19], sizes = [8, 1], strides = [1, 1]} : vector<8x43xf32> to vector<8x1xf32>
    %175 = vector.broadcast %174 : vector<8x1xf32> to vector<8x128xf32>
    %176 = vector.broadcast %169 : vector<1x128xf32> to vector<8x128xf32>
    %177 = arith.mulf %175, %176 : vector<8x128xf32>
    %178 = arith.addf %167, %173 : vector<8x128xf32>
    %179 = arith.addf %168, %177 : vector<8x128xf32>
    %c4 = arith.constant 4 : index
    %c0_10 = arith.constant 0 : index
    %c0_11 = arith.constant 0 : index
    %180 = vector.load %arg1[%c4, %c0_10, %c0_11] : memref<9x4x128xf32, #tpu.memory_space<vmem>>, vector<1x4x128xf32>
    %181 = vector.shape_cast %180 : vector<1x4x128xf32> to vector<4x128xf32>
    %182 = vector.extract_strided_slice %181 {offsets = [0, 0], sizes = [1, 128], strides = [1, 1]} : vector<4x128xf32> to vector<1x128xf32>
    %183 = vector.extract_strided_slice %0 {offsets = [0, 0], sizes = [8, 1], strides = [1, 1]} : vector<8x43xf32> to vector<8x1xf32>
    %184 = vector.broadcast %183 : vector<8x1xf32> to vector<8x128xf32>
    %185 = vector.broadcast %182 : vector<1x128xf32> to vector<8x128xf32>
    %186 = arith.mulf %184, %185 : vector<8x128xf32>
    %187 = vector.extract_strided_slice %0 {offsets = [0, 20], sizes = [8, 1], strides = [1, 1]} : vector<8x43xf32> to vector<8x1xf32>
    %188 = vector.broadcast %187 : vector<8x1xf32> to vector<8x128xf32>
    %189 = vector.broadcast %182 : vector<1x128xf32> to vector<8x128xf32>
    %190 = arith.mulf %188, %189 : vector<8x128xf32>
    %191 = arith.addf %179, %190 : vector<8x128xf32>
    %192 = vector.extract_strided_slice %181 {offsets = [1, 0], sizes = [1, 128], strides = [1, 1]} : vector<4x128xf32> to vector<1x128xf32>
    %193 = vector.extract_strided_slice %0 {offsets = [0, 1], sizes = [8, 1], strides = [1, 1]} : vector<8x43xf32> to vector<8x1xf32>
    %194 = vector.broadcast %193 : vector<8x1xf32> to vector<8x128xf32>
    %195 = vector.broadcast %192 : vector<1x128xf32> to vector<8x128xf32>
    %196 = arith.mulf %194, %195 : vector<8x128xf32>
    %197 = vector.extract_strided_slice %0 {offsets = [0, 21], sizes = [8, 1], strides = [1, 1]} : vector<8x43xf32> to vector<8x1xf32>
    %198 = vector.broadcast %197 : vector<8x1xf32> to vector<8x128xf32>
    %199 = vector.broadcast %192 : vector<1x128xf32> to vector<8x128xf32>
    %200 = arith.mulf %198, %199 : vector<8x128xf32>
    %201 = arith.addf %186, %196 : vector<8x128xf32>
    %202 = arith.addf %191, %200 : vector<8x128xf32>
    %203 = vector.extract_strided_slice %181 {offsets = [2, 0], sizes = [1, 128], strides = [1, 1]} : vector<4x128xf32> to vector<1x128xf32>
    %204 = vector.extract_strided_slice %0 {offsets = [0, 2], sizes = [8, 1], strides = [1, 1]} : vector<8x43xf32> to vector<8x1xf32>
    %205 = vector.broadcast %204 : vector<8x1xf32> to vector<8x128xf32>
    %206 = vector.broadcast %203 : vector<1x128xf32> to vector<8x128xf32>
    %207 = arith.mulf %205, %206 : vector<8x128xf32>
    %208 = vector.extract_strided_slice %0 {offsets = [0, 22], sizes = [8, 1], strides = [1, 1]} : vector<8x43xf32> to vector<8x1xf32>
    %209 = vector.broadcast %208 : vector<8x1xf32> to vector<8x128xf32>
    %210 = vector.broadcast %203 : vector<1x128xf32> to vector<8x128xf32>
    %211 = arith.mulf %209, %210 : vector<8x128xf32>
    %212 = arith.addf %201, %207 : vector<8x128xf32>
    %213 = arith.addf %202, %211 : vector<8x128xf32>
    %214 = vector.extract_strided_slice %181 {offsets = [3, 0], sizes = [1, 128], strides = [1, 1]} : vector<4x128xf32> to vector<1x128xf32>
    %215 = vector.extract_strided_slice %0 {offsets = [0, 3], sizes = [8, 1], strides = [1, 1]} : vector<8x43xf32> to vector<8x1xf32>
    %216 = vector.broadcast %215 : vector<8x1xf32> to vector<8x128xf32>
    %217 = vector.broadcast %214 : vector<1x128xf32> to vector<8x128xf32>
    %218 = arith.mulf %216, %217 : vector<8x128xf32>
    %219 = vector.extract_strided_slice %0 {offsets = [0, 23], sizes = [8, 1], strides = [1, 1]} : vector<8x43xf32> to vector<8x1xf32>
    %220 = vector.broadcast %219 : vector<8x1xf32> to vector<8x128xf32>
    %221 = vector.broadcast %214 : vector<1x128xf32> to vector<8x128xf32>
    %222 = arith.mulf %220, %221 : vector<8x128xf32>
    %223 = arith.addf %212, %218 : vector<8x128xf32>
    %224 = arith.addf %213, %222 : vector<8x128xf32>
    %c5 = arith.constant 5 : index
    %c0_12 = arith.constant 0 : index
    %c0_13 = arith.constant 0 : index
    %225 = vector.load %arg1[%c5, %c0_12, %c0_13] : memref<9x4x128xf32, #tpu.memory_space<vmem>>, vector<1x4x128xf32>
    %226 = vector.shape_cast %225 : vector<1x4x128xf32> to vector<4x128xf32>
    %227 = vector.extract_strided_slice %226 {offsets = [0, 0], sizes = [1, 128], strides = [1, 1]} : vector<4x128xf32> to vector<1x128xf32>
    %228 = vector.extract_strided_slice %0 {offsets = [0, 0], sizes = [8, 1], strides = [1, 1]} : vector<8x43xf32> to vector<8x1xf32>
    %229 = vector.broadcast %228 : vector<8x1xf32> to vector<8x128xf32>
    %230 = vector.broadcast %227 : vector<1x128xf32> to vector<8x128xf32>
    %231 = arith.mulf %229, %230 : vector<8x128xf32>
    %232 = vector.extract_strided_slice %0 {offsets = [0, 24], sizes = [8, 1], strides = [1, 1]} : vector<8x43xf32> to vector<8x1xf32>
    %233 = vector.broadcast %232 : vector<8x1xf32> to vector<8x128xf32>
    %234 = vector.broadcast %227 : vector<1x128xf32> to vector<8x128xf32>
    %235 = arith.mulf %233, %234 : vector<8x128xf32>
    %236 = arith.addf %224, %235 : vector<8x128xf32>
    %237 = vector.extract_strided_slice %226 {offsets = [1, 0], sizes = [1, 128], strides = [1, 1]} : vector<4x128xf32> to vector<1x128xf32>
    %238 = vector.extract_strided_slice %0 {offsets = [0, 1], sizes = [8, 1], strides = [1, 1]} : vector<8x43xf32> to vector<8x1xf32>
    %239 = vector.broadcast %238 : vector<8x1xf32> to vector<8x128xf32>
    %240 = vector.broadcast %237 : vector<1x128xf32> to vector<8x128xf32>
    %241 = arith.mulf %239, %240 : vector<8x128xf32>
    %242 = vector.extract_strided_slice %0 {offsets = [0, 25], sizes = [8, 1], strides = [1, 1]} : vector<8x43xf32> to vector<8x1xf32>
    %243 = vector.broadcast %242 : vector<8x1xf32> to vector<8x128xf32>
    %244 = vector.broadcast %237 : vector<1x128xf32> to vector<8x128xf32>
    %245 = arith.mulf %243, %244 : vector<8x128xf32>
    %246 = arith.addf %231, %241 : vector<8x128xf32>
    %247 = arith.addf %236, %245 : vector<8x128xf32>
    %248 = vector.extract_strided_slice %226 {offsets = [2, 0], sizes = [1, 128], strides = [1, 1]} : vector<4x128xf32> to vector<1x128xf32>
    %249 = vector.extract_strided_slice %0 {offsets = [0, 2], sizes = [8, 1], strides = [1, 1]} : vector<8x43xf32> to vector<8x1xf32>
    %250 = vector.broadcast %249 : vector<8x1xf32> to vector<8x128xf32>
    %251 = vector.broadcast %248 : vector<1x128xf32> to vector<8x128xf32>
    %252 = arith.mulf %250, %251 : vector<8x128xf32>
    %253 = vector.extract_strided_slice %0 {offsets = [0, 26], sizes = [8, 1], strides = [1, 1]} : vector<8x43xf32> to vector<8x1xf32>
    %254 = vector.broadcast %253 : vector<8x1xf32> to vector<8x128xf32>
    %255 = vector.broadcast %248 : vector<1x128xf32> to vector<8x128xf32>
    %256 = arith.mulf %254, %255 : vector<8x128xf32>
    %257 = arith.addf %246, %252 : vector<8x128xf32>
    %258 = arith.addf %247, %256 : vector<8x128xf32>
    %259 = vector.extract_strided_slice %226 {offsets = [3, 0], sizes = [1, 128], strides = [1, 1]} : vector<4x128xf32> to vector<1x128xf32>
    %260 = vector.extract_strided_slice %0 {offsets = [0, 3], sizes = [8, 1], strides = [1, 1]} : vector<8x43xf32> to vector<8x1xf32>
    %261 = vector.broadcast %260 : vector<8x1xf32> to vector<8x128xf32>
    %262 = vector.broadcast %259 : vector<1x128xf32> to vector<8x128xf32>
    %263 = arith.mulf %261, %262 : vector<8x128xf32>
    %264 = vector.extract_strided_slice %0 {offsets = [0, 27], sizes = [8, 1], strides = [1, 1]} : vector<8x43xf32> to vector<8x1xf32>
    %265 = vector.broadcast %264 : vector<8x1xf32> to vector<8x128xf32>
    %266 = vector.broadcast %259 : vector<1x128xf32> to vector<8x128xf32>
    %267 = arith.mulf %265, %266 : vector<8x128xf32>
    %268 = arith.addf %257, %263 : vector<8x128xf32>
    %269 = arith.addf %258, %267 : vector<8x128xf32>
    %c6 = arith.constant 6 : index
    %c0_14 = arith.constant 0 : index
    %c0_15 = arith.constant 0 : index
    %270 = vector.load %arg1[%c6, %c0_14, %c0_15] : memref<9x4x128xf32, #tpu.memory_space<vmem>>, vector<1x4x128xf32>
    %271 = vector.shape_cast %270 : vector<1x4x128xf32> to vector<4x128xf32>
    %272 = vector.extract_strided_slice %271 {offsets = [0, 0], sizes = [1, 128], strides = [1, 1]} : vector<4x128xf32> to vector<1x128xf32>
    %273 = vector.extract_strided_slice %0 {offsets = [0, 0], sizes = [8, 1], strides = [1, 1]} : vector<8x43xf32> to vector<8x1xf32>
    %274 = vector.broadcast %273 : vector<8x1xf32> to vector<8x128xf32>
    %275 = vector.broadcast %272 : vector<1x128xf32> to vector<8x128xf32>
    %276 = arith.mulf %274, %275 : vector<8x128xf32>
    %277 = vector.extract_strided_slice %0 {offsets = [0, 28], sizes = [8, 1], strides = [1, 1]} : vector<8x43xf32> to vector<8x1xf32>
    %278 = vector.broadcast %277 : vector<8x1xf32> to vector<8x128xf32>
    %279 = vector.broadcast %272 : vector<1x128xf32> to vector<8x128xf32>
    %280 = arith.mulf %278, %279 : vector<8x128xf32>
    %281 = arith.addf %269, %280 : vector<8x128xf32>
    %282 = vector.extract_strided_slice %271 {offsets = [1, 0], sizes = [1, 128], strides = [1, 1]} : vector<4x128xf32> to vector<1x128xf32>
    %283 = vector.extract_strided_slice %0 {offsets = [0, 1], sizes = [8, 1], strides = [1, 1]} : vector<8x43xf32> to vector<8x1xf32>
    %284 = vector.broadcast %283 : vector<8x1xf32> to vector<8x128xf32>
    %285 = vector.broadcast %282 : vector<1x128xf32> to vector<8x128xf32>
    %286 = arith.mulf %284, %285 : vector<8x128xf32>
    %287 = vector.extract_strided_slice %0 {offsets = [0, 29], sizes = [8, 1], strides = [1, 1]} : vector<8x43xf32> to vector<8x1xf32>
    %288 = vector.broadcast %287 : vector<8x1xf32> to vector<8x128xf32>
    %289 = vector.broadcast %282 : vector<1x128xf32> to vector<8x128xf32>
    %290 = arith.mulf %288, %289 : vector<8x128xf32>
    %291 = arith.addf %276, %286 : vector<8x128xf32>
    %292 = arith.addf %281, %290 : vector<8x128xf32>
    %293 = vector.extract_strided_slice %271 {offsets = [2, 0], sizes = [1, 128], strides = [1, 1]} : vector<4x128xf32> to vector<1x128xf32>
    %294 = vector.extract_strided_slice %0 {offsets = [0, 2], sizes = [8, 1], strides = [1, 1]} : vector<8x43xf32> to vector<8x1xf32>
    %295 = vector.broadcast %294 : vector<8x1xf32> to vector<8x128xf32>
    %296 = vector.broadcast %293 : vector<1x128xf32> to vector<8x128xf32>
    %297 = arith.mulf %295, %296 : vector<8x128xf32>
    %298 = vector.extract_strided_slice %0 {offsets = [0, 30], sizes = [8, 1], strides = [1, 1]} : vector<8x43xf32> to vector<8x1xf32>
    %299 = vector.broadcast %298 : vector<8x1xf32> to vector<8x128xf32>
    %300 = vector.broadcast %293 : vector<1x128xf32> to vector<8x128xf32>
    %301 = arith.mulf %299, %300 : vector<8x128xf32>
    %302 = arith.addf %291, %297 : vector<8x128xf32>
    %303 = arith.addf %292, %301 : vector<8x128xf32>
    %304 = vector.extract_strided_slice %271 {offsets = [3, 0], sizes = [1, 128], strides = [1, 1]} : vector<4x128xf32> to vector<1x128xf32>
    %305 = vector.extract_strided_slice %0 {offsets = [0, 3], sizes = [8, 1], strides = [1, 1]} : vector<8x43xf32> to vector<8x1xf32>
    %306 = vector.broadcast %305 : vector<8x1xf32> to vector<8x128xf32>
    %307 = vector.broadcast %304 : vector<1x128xf32> to vector<8x128xf32>
    %308 = arith.mulf %306, %307 : vector<8x128xf32>
    %309 = vector.extract_strided_slice %0 {offsets = [0, 31], sizes = [8, 1], strides = [1, 1]} : vector<8x43xf32> to vector<8x1xf32>
    %310 = vector.broadcast %309 : vector<8x1xf32> to vector<8x128xf32>
    %311 = vector.broadcast %304 : vector<1x128xf32> to vector<8x128xf32>
    %312 = arith.mulf %310, %311 : vector<8x128xf32>
    %313 = arith.addf %302, %308 : vector<8x128xf32>
    %314 = arith.addf %303, %312 : vector<8x128xf32>
    %c7 = arith.constant 7 : index
    %c0_16 = arith.constant 0 : index
    %c0_17 = arith.constant 0 : index
    %315 = vector.load %arg1[%c7, %c0_16, %c0_17] : memref<9x4x128xf32, #tpu.memory_space<vmem>>, vector<1x4x128xf32>
    %316 = vector.shape_cast %315 : vector<1x4x128xf32> to vector<4x128xf32>
    %317 = vector.extract_strided_slice %316 {offsets = [0, 0], sizes = [1, 128], strides = [1, 1]} : vector<4x128xf32> to vector<1x128xf32>
    %318 = vector.extract_strided_slice %0 {offsets = [0, 0], sizes = [8, 1], strides = [1, 1]} : vector<8x43xf32> to vector<8x1xf32>
    %319 = vector.broadcast %318 : vector<8x1xf32> to vector<8x128xf32>
    %320 = vector.broadcast %317 : vector<1x128xf32> to vector<8x128xf32>
    %321 = arith.mulf %319, %320 : vector<8x128xf32>
    %322 = vector.extract_strided_slice %0 {offsets = [0, 32], sizes = [8, 1], strides = [1, 1]} : vector<8x43xf32> to vector<8x1xf32>
    %323 = vector.broadcast %322 : vector<8x1xf32> to vector<8x128xf32>
    %324 = vector.broadcast %317 : vector<1x128xf32> to vector<8x128xf32>
    %325 = arith.mulf %323, %324 : vector<8x128xf32>
    %326 = arith.addf %314, %325 : vector<8x128xf32>
    %327 = vector.extract_strided_slice %316 {offsets = [1, 0], sizes = [1, 128], strides = [1, 1]} : vector<4x128xf32> to vector<1x128xf32>
    %328 = vector.extract_strided_slice %0 {offsets = [0, 1], sizes = [8, 1], strides = [1, 1]} : vector<8x43xf32> to vector<8x1xf32>
    %329 = vector.broadcast %328 : vector<8x1xf32> to vector<8x128xf32>
    %330 = vector.broadcast %327 : vector<1x128xf32> to vector<8x128xf32>
    %331 = arith.mulf %329, %330 : vector<8x128xf32>
    %332 = vector.extract_strided_slice %0 {offsets = [0, 33], sizes = [8, 1], strides = [1, 1]} : vector<8x43xf32> to vector<8x1xf32>
    %333 = vector.broadcast %332 : vector<8x1xf32> to vector<8x128xf32>
    %334 = vector.broadcast %327 : vector<1x128xf32> to vector<8x128xf32>
    %335 = arith.mulf %333, %334 : vector<8x128xf32>
    %336 = arith.addf %321, %331 : vector<8x128xf32>
    %337 = arith.addf %326, %335 : vector<8x128xf32>
    %338 = vector.extract_strided_slice %316 {offsets = [2, 0], sizes = [1, 128], strides = [1, 1]} : vector<4x128xf32> to vector<1x128xf32>
    %339 = vector.extract_strided_slice %0 {offsets = [0, 2], sizes = [8, 1], strides = [1, 1]} : vector<8x43xf32> to vector<8x1xf32>
    %340 = vector.broadcast %339 : vector<8x1xf32> to vector<8x128xf32>
    %341 = vector.broadcast %338 : vector<1x128xf32> to vector<8x128xf32>
    %342 = arith.mulf %340, %341 : vector<8x128xf32>
    %343 = vector.extract_strided_slice %0 {offsets = [0, 34], sizes = [8, 1], strides = [1, 1]} : vector<8x43xf32> to vector<8x1xf32>
    %344 = vector.broadcast %343 : vector<8x1xf32> to vector<8x128xf32>
    %345 = vector.broadcast %338 : vector<1x128xf32> to vector<8x128xf32>
    %346 = arith.mulf %344, %345 : vector<8x128xf32>
    %347 = arith.addf %336, %342 : vector<8x128xf32>
    %348 = arith.addf %337, %346 : vector<8x128xf32>
    %349 = vector.extract_strided_slice %316 {offsets = [3, 0], sizes = [1, 128], strides = [1, 1]} : vector<4x128xf32> to vector<1x128xf32>
    %350 = vector.extract_strided_slice %0 {offsets = [0, 3], sizes = [8, 1], strides = [1, 1]} : vector<8x43xf32> to vector<8x1xf32>
    %351 = vector.broadcast %350 : vector<8x1xf32> to vector<8x128xf32>
    %352 = vector.broadcast %349 : vector<1x128xf32> to vector<8x128xf32>
    %353 = arith.mulf %351, %352 : vector<8x128xf32>
    %354 = vector.extract_strided_slice %0 {offsets = [0, 35], sizes = [8, 1], strides = [1, 1]} : vector<8x43xf32> to vector<8x1xf32>
    %355 = vector.broadcast %354 : vector<8x1xf32> to vector<8x128xf32>
    %356 = vector.broadcast %349 : vector<1x128xf32> to vector<8x128xf32>
    %357 = arith.mulf %355, %356 : vector<8x128xf32>
    %358 = arith.addf %347, %353 : vector<8x128xf32>
    %359 = arith.addf %348, %357 : vector<8x128xf32>
    %c8 = arith.constant 8 : index
    %c0_18 = arith.constant 0 : index
    %c0_19 = arith.constant 0 : index
    %360 = vector.load %arg1[%c8, %c0_18, %c0_19] : memref<9x4x128xf32, #tpu.memory_space<vmem>>, vector<1x4x128xf32>
    %361 = vector.shape_cast %360 : vector<1x4x128xf32> to vector<4x128xf32>
    %362 = vector.extract_strided_slice %361 {offsets = [0, 0], sizes = [1, 128], strides = [1, 1]} : vector<4x128xf32> to vector<1x128xf32>
    %363 = vector.extract_strided_slice %0 {offsets = [0, 0], sizes = [8, 1], strides = [1, 1]} : vector<8x43xf32> to vector<8x1xf32>
    %364 = vector.broadcast %363 : vector<8x1xf32> to vector<8x128xf32>
    %365 = vector.broadcast %362 : vector<1x128xf32> to vector<8x128xf32>
    %366 = arith.mulf %364, %365 : vector<8x128xf32>
    %367 = vector.extract_strided_slice %0 {offsets = [0, 36], sizes = [8, 1], strides = [1, 1]} : vector<8x43xf32> to vector<8x1xf32>
    %368 = vector.broadcast %367 : vector<8x1xf32> to vector<8x128xf32>
    %369 = vector.broadcast %362 : vector<1x128xf32> to vector<8x128xf32>
    %370 = arith.mulf %368, %369 : vector<8x128xf32>
    %371 = arith.addf %359, %370 : vector<8x128xf32>
    %372 = vector.extract_strided_slice %361 {offsets = [1, 0], sizes = [1, 128], strides = [1, 1]} : vector<4x128xf32> to vector<1x128xf32>
    %373 = vector.extract_strided_slice %0 {offsets = [0, 1], sizes = [8, 1], strides = [1, 1]} : vector<8x43xf32> to vector<8x1xf32>
    %374 = vector.broadcast %373 : vector<8x1xf32> to vector<8x128xf32>
    %375 = vector.broadcast %372 : vector<1x128xf32> to vector<8x128xf32>
    %376 = arith.mulf %374, %375 : vector<8x128xf32>
    %377 = vector.extract_strided_slice %0 {offsets = [0, 37], sizes = [8, 1], strides = [1, 1]} : vector<8x43xf32> to vector<8x1xf32>
    %378 = vector.broadcast %377 : vector<8x1xf32> to vector<8x128xf32>
    %379 = vector.broadcast %372 : vector<1x128xf32> to vector<8x128xf32>
    %380 = arith.mulf %378, %379 : vector<8x128xf32>
    %381 = arith.addf %366, %376 : vector<8x128xf32>
    %382 = arith.addf %371, %380 : vector<8x128xf32>
    %383 = vector.extract_strided_slice %361 {offsets = [2, 0], sizes = [1, 128], strides = [1, 1]} : vector<4x128xf32> to vector<1x128xf32>
    %384 = vector.extract_strided_slice %0 {offsets = [0, 2], sizes = [8, 1], strides = [1, 1]} : vector<8x43xf32> to vector<8x1xf32>
    %385 = vector.broadcast %384 : vector<8x1xf32> to vector<8x128xf32>
    %386 = vector.broadcast %383 : vector<1x128xf32> to vector<8x128xf32>
    %387 = arith.mulf %385, %386 : vector<8x128xf32>
    %388 = vector.extract_strided_slice %0 {offsets = [0, 38], sizes = [8, 1], strides = [1, 1]} : vector<8x43xf32> to vector<8x1xf32>
    %389 = vector.broadcast %388 : vector<8x1xf32> to vector<8x128xf32>
    %390 = vector.broadcast %383 : vector<1x128xf32> to vector<8x128xf32>
    %391 = arith.mulf %389, %390 : vector<8x128xf32>
    %392 = arith.addf %381, %387 : vector<8x128xf32>
    %393 = arith.addf %382, %391 : vector<8x128xf32>
    %394 = vector.extract_strided_slice %361 {offsets = [3, 0], sizes = [1, 128], strides = [1, 1]} : vector<4x128xf32> to vector<1x128xf32>
    %395 = vector.extract_strided_slice %0 {offsets = [0, 3], sizes = [8, 1], strides = [1, 1]} : vector<8x43xf32> to vector<8x1xf32>
    %396 = vector.broadcast %395 : vector<8x1xf32> to vector<8x128xf32>
    %397 = vector.broadcast %394 : vector<1x128xf32> to vector<8x128xf32>
    %398 = arith.mulf %396, %397 : vector<8x128xf32>
    %399 = vector.extract_strided_slice %0 {offsets = [0, 39], sizes = [8, 1], strides = [1, 1]} : vector<8x43xf32> to vector<8x1xf32>
    %400 = vector.broadcast %399 : vector<8x1xf32> to vector<8x128xf32>
    %401 = vector.broadcast %394 : vector<1x128xf32> to vector<8x128xf32>
    %402 = arith.mulf %400, %401 : vector<8x128xf32>
    %403 = arith.addf %392, %398 : vector<8x128xf32>
    %404 = arith.addf %393, %402 : vector<8x128xf32>
    %405 = vector.extract_strided_slice %0 {offsets = [0, 40], sizes = [8, 1], strides = [1, 1]} : vector<8x43xf32> to vector<8x1xf32>
    %406 = vector.broadcast %405 : vector<8x1xf32> to vector<8x128xf32>
    %407 = arith.addf %404, %406 : vector<8x128xf32>
    %408 = vector.extract_strided_slice %0 {offsets = [0, 41], sizes = [8, 1], strides = [1, 1]} : vector<8x43xf32> to vector<8x1xf32>
    %409 = vector.extract_strided_slice %0 {offsets = [0, 42], sizes = [8, 1], strides = [1, 1]} : vector<8x43xf32> to vector<8x1xf32>
    %410 = arith.addf %43, %407 : vector<8x128xf32>
    %cst = arith.constant dense<0.000000e+00> : vector<128xf32>
    %411 = vector.multi_reduction <add>, %410, %cst [0] : vector<8x128xf32> to vector<128xf32>
    %412 = vector.shape_cast %411 : vector<128xf32> to vector<1x128xf32>
    %cst_20 = arith.constant 8.000000e+00 : f32
    %413 = vector.broadcast %cst_20 : f32 to vector<1x128xf32>
    %414 = arith.divf %412, %413 : vector<1x128xf32>
    %415 = vector.broadcast %414 : vector<1x128xf32> to vector<8x128xf32>
    %416 = arith.subf %410, %415 : vector<8x128xf32>
    %417 = arith.mulf %416, %416 : vector<8x128xf32>
    %cst_21 = arith.constant dense<0.000000e+00> : vector<128xf32>
    %418 = vector.multi_reduction <add>, %417, %cst_21 [0] : vector<8x128xf32> to vector<128xf32>
    %419 = vector.shape_cast %418 : vector<128xf32> to vector<1x128xf32>
    %cst_22 = arith.constant 8.000000e+00 : f32
    %420 = vector.broadcast %cst_22 : f32 to vector<1x128xf32>
    %421 = arith.divf %419, %420 : vector<1x128xf32>
    %cst_23 = arith.constant 9.99999974E-6 : f32
    %422 = vector.broadcast %cst_23 : f32 to vector<1x128xf32>
    %423 = arith.addf %421, %422 : vector<1x128xf32>
    %424 = math.rsqrt %423 : vector<1x128xf32>
    %425 = vector.broadcast %424 : vector<1x128xf32> to vector<8x128xf32>
    %426 = arith.mulf %416, %425 : vector<8x128xf32>
    %427 = vector.broadcast %408 : vector<8x1xf32> to vector<8x128xf32>
    %428 = arith.mulf %426, %427 : vector<8x128xf32>
    %429 = vector.broadcast %409 : vector<8x1xf32> to vector<8x128xf32>
    %430 = arith.addf %428, %429 : vector<8x128xf32>
    %c0_24 = arith.constant 0 : index
    %c0_25 = arith.constant 0 : index
    %c0_26 = arith.constant 0 : index
    %431 = vector.load %arg3[%c0_24, %c0_25, %c0_26] : memref<9x8x128xf32, #tpu.memory_space<vmem>>, vector<1x8x128xf32>
    %432 = vector.shape_cast %431 : vector<1x8x128xf32> to vector<8x128xf32>
    %433 = vector.shape_cast %430 : vector<8x128xf32> to vector<1x8x128xf32>
    tpu.vector_store %arg3[%c0_24, %c0_25, %c0_26], %433 {strides = array<i32>} : memref<9x8x128xf32, #tpu.memory_space<vmem>>, vector<1x8x128xf32>,
    %434 = arith.addf %88, %407 : vector<8x128xf32>
    %cst_27 = arith.constant dense<0.000000e+00> : vector<128xf32>
    %435 = vector.multi_reduction <add>, %434, %cst_27 [0] : vector<8x128xf32> to vector<128xf32>
    %436 = vector.shape_cast %435 : vector<128xf32> to vector<1x128xf32>
    %cst_28 = arith.constant 8.000000e+00 : f32
    %437 = vector.broadcast %cst_28 : f32 to vector<1x128xf32>
    %438 = arith.divf %436, %437 : vector<1x128xf32>
    %439 = vector.broadcast %438 : vector<1x128xf32> to vector<8x128xf32>
    %440 = arith.subf %434, %439 : vector<8x128xf32>
    %441 = arith.mulf %440, %440 : vector<8x128xf32>
    %cst_29 = arith.constant dense<0.000000e+00> : vector<128xf32>
    %442 = vector.multi_reduction <add>, %441, %cst_29 [0] : vector<8x128xf32> to vector<128xf32>
    %443 = vector.shape_cast %442 : vector<128xf32> to vector<1x128xf32>
    %cst_30 = arith.constant 8.000000e+00 : f32
    %444 = vector.broadcast %cst_30 : f32 to vector<1x128xf32>
    %445 = arith.divf %443, %444 : vector<1x128xf32>
    %cst_31 = arith.constant 9.99999974E-6 : f32
    %446 = vector.broadcast %cst_31 : f32 to vector<1x128xf32>
    %447 = arith.addf %445, %446 : vector<1x128xf32>
    %448 = math.rsqrt %447 : vector<1x128xf32>
    %449 = vector.broadcast %448 : vector<1x128xf32> to vector<8x128xf32>
    %450 = arith.mulf %440, %449 : vector<8x128xf32>
    %451 = vector.broadcast %408 : vector<8x1xf32> to vector<8x128xf32>
    %452 = arith.mulf %450, %451 : vector<8x128xf32>
    %453 = vector.broadcast %409 : vector<8x1xf32> to vector<8x128xf32>
    %454 = arith.addf %452, %453 : vector<8x128xf32>
    %c1_32 = arith.constant 1 : index
    %c0_33 = arith.constant 0 : index
    %c0_34 = arith.constant 0 : index
    %455 = vector.load %arg3[%c1_32, %c0_33, %c0_34] : memref<9x8x128xf32, #tpu.memory_space<vmem>>, vector<1x8x128xf32>
    %456 = vector.shape_cast %455 : vector<1x8x128xf32> to vector<8x128xf32>
    %457 = vector.shape_cast %454 : vector<8x128xf32> to vector<1x8x128xf32>
    tpu.vector_store %arg3[%c1_32, %c0_33, %c0_34], %457 {strides = array<i32>} : memref<9x8x128xf32, #tpu.memory_space<vmem>>, vector<1x8x128xf32>,
    %458 = arith.addf %133, %407 : vector<8x128xf32>
    %cst_35 = arith.constant dense<0.000000e+00> : vector<128xf32>
    %459 = vector.multi_reduction <add>, %458, %cst_35 [0] : vector<8x128xf32> to vector<128xf32>
    %460 = vector.shape_cast %459 : vector<128xf32> to vector<1x128xf32>
    %cst_36 = arith.constant 8.000000e+00 : f32
    %461 = vector.broadcast %cst_36 : f32 to vector<1x128xf32>
    %462 = arith.divf %460, %461 : vector<1x128xf32>
    %463 = vector.broadcast %462 : vector<1x128xf32> to vector<8x128xf32>
    %464 = arith.subf %458, %463 : vector<8x128xf32>
    %465 = arith.mulf %464, %464 : vector<8x128xf32>
    %cst_37 = arith.constant dense<0.000000e+00> : vector<128xf32>
    %466 = vector.multi_reduction <add>, %465, %cst_37 [0] : vector<8x128xf32> to vector<128xf32>
    %467 = vector.shape_cast %466 : vector<128xf32> to vector<1x128xf32>
    %cst_38 = arith.constant 8.000000e+00 : f32
    %468 = vector.broadcast %cst_38 : f32 to vector<1x128xf32>
    %469 = arith.divf %467, %468 : vector<1x128xf32>
    %cst_39 = arith.constant 9.99999974E-6 : f32
    %470 = vector.broadcast %cst_39 : f32 to vector<1x128xf32>
    %471 = arith.addf %469, %470 : vector<1x128xf32>
    %472 = math.rsqrt %471 : vector<1x128xf32>
    %473 = vector.broadcast %472 : vector<1x128xf32> to vector<8x128xf32>
    %474 = arith.mulf %464, %473 : vector<8x128xf32>
    %475 = vector.broadcast %408 : vector<8x1xf32> to vector<8x128xf32>
    %476 = arith.mulf %474, %475 : vector<8x128xf32>
    %477 = vector.broadcast %409 : vector<8x1xf32> to vector<8x128xf32>
    %478 = arith.addf %476, %477 : vector<8x128xf32>
    %c2_40 = arith.constant 2 : index
    %c0_41 = arith.constant 0 : index
    %c0_42 = arith.constant 0 : index
    %479 = vector.load %arg3[%c2_40, %c0_41, %c0_42] : memref<9x8x128xf32, #tpu.memory_space<vmem>>, vector<1x8x128xf32>
    %480 = vector.shape_cast %479 : vector<1x8x128xf32> to vector<8x128xf32>
    %481 = vector.shape_cast %478 : vector<8x128xf32> to vector<1x8x128xf32>
    tpu.vector_store %arg3[%c2_40, %c0_41, %c0_42], %481 {strides = array<i32>} : memref<9x8x128xf32, #tpu.memory_space<vmem>>, vector<1x8x128xf32>,
    %482 = arith.addf %178, %407 : vector<8x128xf32>
    %cst_43 = arith.constant dense<0.000000e+00> : vector<128xf32>
    %483 = vector.multi_reduction <add>, %482, %cst_43 [0] : vector<8x128xf32> to vector<128xf32>
    %484 = vector.shape_cast %483 : vector<128xf32> to vector<1x128xf32>
    %cst_44 = arith.constant 8.000000e+00 : f32
    %485 = vector.broadcast %cst_44 : f32 to vector<1x128xf32>
    %486 = arith.divf %484, %485 : vector<1x128xf32>
    %487 = vector.broadcast %486 : vector<1x128xf32> to vector<8x128xf32>
    %488 = arith.subf %482, %487 : vector<8x128xf32>
    %489 = arith.mulf %488, %488 : vector<8x128xf32>
    %cst_45 = arith.constant dense<0.000000e+00> : vector<128xf32>
    %490 = vector.multi_reduction <add>, %489, %cst_45 [0] : vector<8x128xf32> to vector<128xf32>
    %491 = vector.shape_cast %490 : vector<128xf32> to vector<1x128xf32>
    %cst_46 = arith.constant 8.000000e+00 : f32
    %492 = vector.broadcast %cst_46 : f32 to vector<1x128xf32>
    %493 = arith.divf %491, %492 : vector<1x128xf32>
    %cst_47 = arith.constant 9.99999974E-6 : f32
    %494 = vector.broadcast %cst_47 : f32 to vector<1x128xf32>
    %495 = arith.addf %493, %494 : vector<1x128xf32>
    %496 = math.rsqrt %495 : vector<1x128xf32>
    %497 = vector.broadcast %496 : vector<1x128xf32> to vector<8x128xf32>
    %498 = arith.mulf %488, %497 : vector<8x128xf32>
    %499 = vector.broadcast %408 : vector<8x1xf32> to vector<8x128xf32>
    %500 = arith.mulf %498, %499 : vector<8x128xf32>
    %501 = vector.broadcast %409 : vector<8x1xf32> to vector<8x128xf32>
    %502 = arith.addf %500, %501 : vector<8x128xf32>
    %c3_48 = arith.constant 3 : index
    %c0_49 = arith.constant 0 : index
    %c0_50 = arith.constant 0 : index
    %503 = vector.load %arg3[%c3_48, %c0_49, %c0_50] : memref<9x8x128xf32, #tpu.memory_space<vmem>>, vector<1x8x128xf32>
    %504 = vector.shape_cast %503 : vector<1x8x128xf32> to vector<8x128xf32>
    %505 = vector.shape_cast %502 : vector<8x128xf32> to vector<1x8x128xf32>
    tpu.vector_store %arg3[%c3_48, %c0_49, %c0_50], %505 {strides = array<i32>} : memref<9x8x128xf32, #tpu.memory_space<vmem>>, vector<1x8x128xf32>,
    %506 = arith.addf %223, %407 : vector<8x128xf32>
    %cst_51 = arith.constant dense<0.000000e+00> : vector<128xf32>
    %507 = vector.multi_reduction <add>, %506, %cst_51 [0] : vector<8x128xf32> to vector<128xf32>
    %508 = vector.shape_cast %507 : vector<128xf32> to vector<1x128xf32>
    %cst_52 = arith.constant 8.000000e+00 : f32
    %509 = vector.broadcast %cst_52 : f32 to vector<1x128xf32>
    %510 = arith.divf %508, %509 : vector<1x128xf32>
    %511 = vector.broadcast %510 : vector<1x128xf32> to vector<8x128xf32>
    %512 = arith.subf %506, %511 : vector<8x128xf32>
    %513 = arith.mulf %512, %512 : vector<8x128xf32>
    %cst_53 = arith.constant dense<0.000000e+00> : vector<128xf32>
    %514 = vector.multi_reduction <add>, %513, %cst_53 [0] : vector<8x128xf32> to vector<128xf32>
    %515 = vector.shape_cast %514 : vector<128xf32> to vector<1x128xf32>
    %cst_54 = arith.constant 8.000000e+00 : f32
    %516 = vector.broadcast %cst_54 : f32 to vector<1x128xf32>
    %517 = arith.divf %515, %516 : vector<1x128xf32>
    %cst_55 = arith.constant 9.99999974E-6 : f32
    %518 = vector.broadcast %cst_55 : f32 to vector<1x128xf32>
    %519 = arith.addf %517, %518 : vector<1x128xf32>
    %520 = math.rsqrt %519 : vector<1x128xf32>
    %521 = vector.broadcast %520 : vector<1x128xf32> to vector<8x128xf32>
    %522 = arith.mulf %512, %521 : vector<8x128xf32>
    %523 = vector.broadcast %408 : vector<8x1xf32> to vector<8x128xf32>
    %524 = arith.mulf %522, %523 : vector<8x128xf32>
    %525 = vector.broadcast %409 : vector<8x1xf32> to vector<8x128xf32>
    %526 = arith.addf %524, %525 : vector<8x128xf32>
    %c4_56 = arith.constant 4 : index
    %c0_57 = arith.constant 0 : index
    %c0_58 = arith.constant 0 : index
    %527 = vector.load %arg3[%c4_56, %c0_57, %c0_58] : memref<9x8x128xf32, #tpu.memory_space<vmem>>, vector<1x8x128xf32>
    %528 = vector.shape_cast %527 : vector<1x8x128xf32> to vector<8x128xf32>
    %529 = vector.shape_cast %526 : vector<8x128xf32> to vector<1x8x128xf32>
    tpu.vector_store %arg3[%c4_56, %c0_57, %c0_58], %529 {strides = array<i32>} : memref<9x8x128xf32, #tpu.memory_space<vmem>>, vector<1x8x128xf32>,
    %530 = arith.addf %268, %407 : vector<8x128xf32>
    %cst_59 = arith.constant dense<0.000000e+00> : vector<128xf32>
    %531 = vector.multi_reduction <add>, %530, %cst_59 [0] : vector<8x128xf32> to vector<128xf32>
    %532 = vector.shape_cast %531 : vector<128xf32> to vector<1x128xf32>
    %cst_60 = arith.constant 8.000000e+00 : f32
    %533 = vector.broadcast %cst_60 : f32 to vector<1x128xf32>
    %534 = arith.divf %532, %533 : vector<1x128xf32>
    %535 = vector.broadcast %534 : vector<1x128xf32> to vector<8x128xf32>
    %536 = arith.subf %530, %535 : vector<8x128xf32>
    %537 = arith.mulf %536, %536 : vector<8x128xf32>
    %cst_61 = arith.constant dense<0.000000e+00> : vector<128xf32>
    %538 = vector.multi_reduction <add>, %537, %cst_61 [0] : vector<8x128xf32> to vector<128xf32>
    %539 = vector.shape_cast %538 : vector<128xf32> to vector<1x128xf32>
    %cst_62 = arith.constant 8.000000e+00 : f32
    %540 = vector.broadcast %cst_62 : f32 to vector<1x128xf32>
    %541 = arith.divf %539, %540 : vector<1x128xf32>
    %cst_63 = arith.constant 9.99999974E-6 : f32
    %542 = vector.broadcast %cst_63 : f32 to vector<1x128xf32>
    %543 = arith.addf %541, %542 : vector<1x128xf32>
    %544 = math.rsqrt %543 : vector<1x128xf32>
    %545 = vector.broadcast %544 : vector<1x128xf32> to vector<8x128xf32>
    %546 = arith.mulf %536, %545 : vector<8x128xf32>
    %547 = vector.broadcast %408 : vector<8x1xf32> to vector<8x128xf32>
    %548 = arith.mulf %546, %547 : vector<8x128xf32>
    %549 = vector.broadcast %409 : vector<8x1xf32> to vector<8x128xf32>
    %550 = arith.addf %548, %549 : vector<8x128xf32>
    %c5_64 = arith.constant 5 : index
    %c0_65 = arith.constant 0 : index
    %c0_66 = arith.constant 0 : index
    %551 = vector.load %arg3[%c5_64, %c0_65, %c0_66] : memref<9x8x128xf32, #tpu.memory_space<vmem>>, vector<1x8x128xf32>
    %552 = vector.shape_cast %551 : vector<1x8x128xf32> to vector<8x128xf32>
    %553 = vector.shape_cast %550 : vector<8x128xf32> to vector<1x8x128xf32>
    tpu.vector_store %arg3[%c5_64, %c0_65, %c0_66], %553 {strides = array<i32>} : memref<9x8x128xf32, #tpu.memory_space<vmem>>, vector<1x8x128xf32>,
    %554 = arith.addf %313, %407 : vector<8x128xf32>
    %cst_67 = arith.constant dense<0.000000e+00> : vector<128xf32>
    %555 = vector.multi_reduction <add>, %554, %cst_67 [0] : vector<8x128xf32> to vector<128xf32>
    %556 = vector.shape_cast %555 : vector<128xf32> to vector<1x128xf32>
    %cst_68 = arith.constant 8.000000e+00 : f32
    %557 = vector.broadcast %cst_68 : f32 to vector<1x128xf32>
    %558 = arith.divf %556, %557 : vector<1x128xf32>
    %559 = vector.broadcast %558 : vector<1x128xf32> to vector<8x128xf32>
    %560 = arith.subf %554, %559 : vector<8x128xf32>
    %561 = arith.mulf %560, %560 : vector<8x128xf32>
    %cst_69 = arith.constant dense<0.000000e+00> : vector<128xf32>
    %562 = vector.multi_reduction <add>, %561, %cst_69 [0] : vector<8x128xf32> to vector<128xf32>
    %563 = vector.shape_cast %562 : vector<128xf32> to vector<1x128xf32>
    %cst_70 = arith.constant 8.000000e+00 : f32
    %564 = vector.broadcast %cst_70 : f32 to vector<1x128xf32>
    %565 = arith.divf %563, %564 : vector<1x128xf32>
    %cst_71 = arith.constant 9.99999974E-6 : f32
    %566 = vector.broadcast %cst_71 : f32 to vector<1x128xf32>
    %567 = arith.addf %565, %566 : vector<1x128xf32>
    %568 = math.rsqrt %567 : vector<1x128xf32>
    %569 = vector.broadcast %568 : vector<1x128xf32> to vector<8x128xf32>
    %570 = arith.mulf %560, %569 : vector<8x128xf32>
    %571 = vector.broadcast %408 : vector<8x1xf32> to vector<8x128xf32>
    %572 = arith.mulf %570, %571 : vector<8x128xf32>
    %573 = vector.broadcast %409 : vector<8x1xf32> to vector<8x128xf32>
    %574 = arith.addf %572, %573 : vector<8x128xf32>
    %c6_72 = arith.constant 6 : index
    %c0_73 = arith.constant 0 : index
    %c0_74 = arith.constant 0 : index
    %575 = vector.load %arg3[%c6_72, %c0_73, %c0_74] : memref<9x8x128xf32, #tpu.memory_space<vmem>>, vector<1x8x128xf32>
    %576 = vector.shape_cast %575 : vector<1x8x128xf32> to vector<8x128xf32>
    %577 = vector.shape_cast %574 : vector<8x128xf32> to vector<1x8x128xf32>
    tpu.vector_store %arg3[%c6_72, %c0_73, %c0_74], %577 {strides = array<i32>} : memref<9x8x128xf32, #tpu.memory_space<vmem>>, vector<1x8x128xf32>,
    %578 = arith.addf %358, %407 : vector<8x128xf32>
    %cst_75 = arith.constant dense<0.000000e+00> : vector<128xf32>
    %579 = vector.multi_reduction <add>, %578, %cst_75 [0] : vector<8x128xf32> to vector<128xf32>
    %580 = vector.shape_cast %579 : vector<128xf32> to vector<1x128xf32>
    %cst_76 = arith.constant 8.000000e+00 : f32
    %581 = vector.broadcast %cst_76 : f32 to vector<1x128xf32>
    %582 = arith.divf %580, %581 : vector<1x128xf32>
    %583 = vector.broadcast %582 : vector<1x128xf32> to vector<8x128xf32>
    %584 = arith.subf %578, %583 : vector<8x128xf32>
    %585 = arith.mulf %584, %584 : vector<8x128xf32>
    %cst_77 = arith.constant dense<0.000000e+00> : vector<128xf32>
    %586 = vector.multi_reduction <add>, %585, %cst_77 [0] : vector<8x128xf32> to vector<128xf32>
    %587 = vector.shape_cast %586 : vector<128xf32> to vector<1x128xf32>
    %cst_78 = arith.constant 8.000000e+00 : f32
    %588 = vector.broadcast %cst_78 : f32 to vector<1x128xf32>
    %589 = arith.divf %587, %588 : vector<1x128xf32>
    %cst_79 = arith.constant 9.99999974E-6 : f32
    %590 = vector.broadcast %cst_79 : f32 to vector<1x128xf32>
    %591 = arith.addf %589, %590 : vector<1x128xf32>
    %592 = math.rsqrt %591 : vector<1x128xf32>
    %593 = vector.broadcast %592 : vector<1x128xf32> to vector<8x128xf32>
    %594 = arith.mulf %584, %593 : vector<8x128xf32>
    %595 = vector.broadcast %408 : vector<8x1xf32> to vector<8x128xf32>
    %596 = arith.mulf %594, %595 : vector<8x128xf32>
    %597 = vector.broadcast %409 : vector<8x1xf32> to vector<8x128xf32>
    %598 = arith.addf %596, %597 : vector<8x128xf32>
    %c7_80 = arith.constant 7 : index
    %c0_81 = arith.constant 0 : index
    %c0_82 = arith.constant 0 : index
    %599 = vector.load %arg3[%c7_80, %c0_81, %c0_82] : memref<9x8x128xf32, #tpu.memory_space<vmem>>, vector<1x8x128xf32>
    %600 = vector.shape_cast %599 : vector<1x8x128xf32> to vector<8x128xf32>
    %601 = vector.shape_cast %598 : vector<8x128xf32> to vector<1x8x128xf32>
    tpu.vector_store %arg3[%c7_80, %c0_81, %c0_82], %601 {strides = array<i32>} : memref<9x8x128xf32, #tpu.memory_space<vmem>>, vector<1x8x128xf32>,
    %602 = arith.addf %403, %407 : vector<8x128xf32>
    %cst_83 = arith.constant dense<0.000000e+00> : vector<128xf32>
    %603 = vector.multi_reduction <add>, %602, %cst_83 [0] : vector<8x128xf32> to vector<128xf32>
    %604 = vector.shape_cast %603 : vector<128xf32> to vector<1x128xf32>
    %cst_84 = arith.constant 8.000000e+00 : f32
    %605 = vector.broadcast %cst_84 : f32 to vector<1x128xf32>
    %606 = arith.divf %604, %605 : vector<1x128xf32>
    %607 = vector.broadcast %606 : vector<1x128xf32> to vector<8x128xf32>
    %608 = arith.subf %602, %607 : vector<8x128xf32>
    %609 = arith.mulf %608, %608 : vector<8x128xf32>
    %cst_85 = arith.constant dense<0.000000e+00> : vector<128xf32>
    %610 = vector.multi_reduction <add>, %609, %cst_85 [0] : vector<8x128xf32> to vector<128xf32>
    %611 = vector.shape_cast %610 : vector<128xf32> to vector<1x128xf32>
    %cst_86 = arith.constant 8.000000e+00 : f32
    %612 = vector.broadcast %cst_86 : f32 to vector<1x128xf32>
    %613 = arith.divf %611, %612 : vector<1x128xf32>
    %cst_87 = arith.constant 9.99999974E-6 : f32
    %614 = vector.broadcast %cst_87 : f32 to vector<1x128xf32>
    %615 = arith.addf %613, %614 : vector<1x128xf32>
    %616 = math.rsqrt %615 : vector<1x128xf32>
    %617 = vector.broadcast %616 : vector<1x128xf32> to vector<8x128xf32>
    %618 = arith.mulf %608, %617 : vector<8x128xf32>
    %619 = vector.broadcast %408 : vector<8x1xf32> to vector<8x128xf32>
    %620 = arith.mulf %618, %619 : vector<8x128xf32>
    %621 = vector.broadcast %409 : vector<8x1xf32> to vector<8x128xf32>
    %622 = arith.addf %620, %621 : vector<8x128xf32>
    %c8_88 = arith.constant 8 : index
    %c0_89 = arith.constant 0 : index
    %c0_90 = arith.constant 0 : index
    %623 = vector.load %arg3[%c8_88, %c0_89, %c0_90] : memref<9x8x128xf32, #tpu.memory_space<vmem>>, vector<1x8x128xf32>
    %624 = vector.shape_cast %623 : vector<1x8x128xf32> to vector<8x128xf32>
    %625 = vector.shape_cast %622 : vector<8x128xf32> to vector<1x8x128xf32>
    tpu.vector_store %arg3[%c8_88, %c0_89, %c0_90], %625 {strides = array<i32>} : memref<9x8x128xf32, #tpu.memory_space<vmem>>, vector<1x8x128xf32>,
    return
  }
  func.func @transform_0(%arg0: i32) -> (i32, i32, i32) {
    %c0_i32 = arith.constant 0 : i32
    %c0_i32_0 = arith.constant 0 : i32
    %c0_i32_1 = arith.constant 0 : i32
    return %c0_i32, %c0_i32_0, %arg0 : i32, i32, i32
  }
  func.func @transform_1(%arg0: i32) -> (i32, i32) {
    %c0_i32 = arith.constant 0 : i32
    %c0_i32_0 = arith.constant 0 : i32
    %c0_i32_1 = arith.constant 0 : i32
    return %c0_i32, %c0_i32_0 : i32, i32
  }
  func.func @transform_2(%arg0: i32) -> (i32, i32, i32) {
    %c0_i32 = arith.constant 0 : i32
    %c0_i32_0 = arith.constant 0 : i32
    %c0_i32_1 = arith.constant 0 : i32
    return %c0_i32, %c0_i32_0, %arg0 : i32, i32, i32
  }
}

</mosaic_0001>

<bundles_post_ra>
// kernel: tpu_custom_call.1
= control target key start
LH: loop header
LB: loop body
LE: loop exit
PB: predicated region body
PF: predicated region fallthrough
CT: control target
= control target key end

     0   :  { %7 = vsyncpa [#allocation3], 0  ;;  %s2058_s0 = inlined_call_operand.hbm [shape: f32[9,4,256], index: 0, kind: input, shape index: {}]   ;;  %s2059_s1 = inlined_call_operand.hbm [shape: f32[8,43], index: 1, kind: input, shape index: {}]   ;;  %s2060_s2 = inlined_call_operand.hbm [shape: f32[9,8,256], index: 2, kind: output, shape index: {}]  }
   0x1   :  { %9 = vsyncpa [#allocation3 + $0x1], 0 }
   0x2   :  { %10 = vsyncpa [#allocation6], 0 }
   0x3   :  { %11 = vsyncpa [#allocation4], 0 }
   0x4   :  { %13 = vsyncpa [#allocation4 + $0x1], 0  ;;  %s1339_s9 = smov 0   ;;  %s1341_s10 = smov 0  }
   0x5   :  { %s1343_s11 = smov 0   ;;  %s1345_s12 = smov 0  }
   0x6 LB: > { %s1360_s13 = sadd.s32 4294967295, %s1271_s12   ;;  %s941_s14 = sadd.s32 4294967294, %s1271_s12   ;;  %s1271_s12 = sphi %s1345_s12, %s2105_s12   ;;  %s1267_s11 = sphi %s1343_s11, %s2104_s11   ;;  %s1263_s10 = sphi %s1341_s10, %s2103_s10   ;;  %s1259_s9 = sphi %s1339_s9, %s2102_s9  }
   0x7   : > { %s1364_s15 = sadd.s32 1, %s1271_s12   ;;  %s26_s16 = sadd.s32 1, %s1267_s11 }
   0x8   : > { %s23_s17 = ssub.s32 %s1271_s12, %s1364_s15  ;;  %p33_p0 = scmp.ne.s32.totalorder %s1267_s11, %s1263_s10 }
   0x9   : > { %p24_p1 = scmp.eq.s32.totalorder %s23_s17, 0  ;;  %p34_p2 = scmp.eq.s32.totalorder %s1271_s12, 0 }
   0xa   : > { %p39_p3 = scmp.ne.s32.totalorder %s1263_s10, %s1259_s9  ;;  %p40_p4 = scmp.eq.s32.totalorder %s1360_s13, 0 }
   0xb   : > { %s1376_s18 = scalar_select %p24_p1, %s1267_s11, %s26_s16  }
   0xc   : > { %p1378_p5 = por %p34_p2, %p33_p0  ;;  %p1384_p6 = por %p40_p4, %p39_p3 }
   0xd   : > { %p84_p7 = scmp.eq.s32.totalorder %s1360_s13, 1  ;;  %p90_p8 = scmp.eq.s32.totalorder %s941_s14, 1 }
   0xe   : > { %p942_p9 = scmp.ge.s32.totalorder %s1271_s12, 1  ;;  %p97_p10 = scmp.lt.s32.totalorder %s1271_s12, 3 }
   0xf   : > { %p1391_p11 = por %p84_p7, %p33_p0  ;;  %p1395_p12 = por %p90_p8, %p39_p3 }
  0x10   : > { %p1399_p13 = pnand %p942_p9, %p97_p10  ;;  %s109_s26 = sshll.u32 %s2059_s1, 4  ;;  %s110_s26 = int_to_ptr.hbm [resolvable:$true] %s109_s26 }
  0x11   : > { %s1273_s27 = smov [#allocation5]   ;;  %p991_p3 = scmp.lt.s32.totalorder %s1271_s12, 2 }
  0x12   : > { %p978_p1 = pneg %p1399_p13  ;;  %s111_s28 = sshll.u32 %s1273_s27, 4  ;;  %s112_s28 = int_to_ptr.vmem [resolvable:$true] %s111_s28 }
  0x13   : > { %s122_s29 = sand.u32 1, %s1267_s11   ;;  %p1415_p7 = pnand %p991_p3, %p1378_p5 }
  0x14   : > { %p979_p2 = pnand %p978_p1, %p40_p4  ;;  %s967_s3 = smul.u32 36, %s122_s29 }
  0x15   : > { %s945_s4 = sshll.u32 %s1271_s12, 2  ;;  %s123_s17 = scalar_lea.sflag [#allocation3], %s122_s29 }
  0x16   : > { %981 = dma.hbm_to_vmem [thread:$0]  (!%p979_p2), %s110_s26, 128, %s112_s28, [#allocation6]  }
  0x17   : > { %s130_s7 = scalar_lea.hbm %s2058_s0, %s945_s4  ;;  %s126_s8 = scalar_lea.vmem [#allocation2], %s967_s3 }
  0x18   : > { %s133_s14 = sshll.u32 %s126_s8, 4  ;;  %s131_s16 = sshll.u32 %s130_s7, 4  ;;  %s134_s14 = int_to_ptr.vmem [resolvable:$true] %s133_s14  ;;  %s132_s16 = int_to_ptr.hbm [resolvable:$true] %s131_s16 }
  0x19   : > { %s1171_s24 = sshra.s32 %s132_s16, 4  ;;  %p1175_p8 = pneg %p1415_p7  ;;  %s1172_s24 = int_to_ptr.hbm [resolvable:$true] %s1171_s24 }
  0x1a   : > { %s1173_s19 = scalar_lea.hbm %s1172_s24, 36  ;;  %s1178_s27 = scalar_lea.hbm %s2058_s0, 72 }
  0x1b   : > { %p1174_p5 = scmp.ne.s32.totalorder %s1172_s24, %s1173_s19  ;;  %p1179_p1 = scmp.lt.s32.totalorder %s1172_s24, %s2058_s0 }
  0x1c   : > { %p1180_p2 = scmp.lt.s32.totalorder %s1178_s27, %s1173_s19 }
  0x1d   : > { %p1176_p9 = pnand %p1175_p8, %p1174_p5 }
  0x1e   : > { %p1181_p3 = por %p1180_p2, %p1179_p1 }
  0x1f   : > { %p1177_p10 = pneg %p1176_p9 }
  0x21   : > { %p1182_p0 = pnand %p1181_p3, %p1177_p10 }
  0x23   : > { %1185 = shalt.err (!%p1182_p0)
}
  0x24   : > { %s1274_s29 = smov 128   ;;  %s1275_s3 = smov 64  }
  0x25   : > { %s1276_s5 = smov 4   ;;  %145 = sbr.rel (%p1399_p13) target bundleno = 411 (0x19b), region = 28 }
  0x26   : > { %985 = dma.hbm_to_vmem [thread:$0]  (!%p1415_p7), %s132_s16, 576, %s134_s14, %s123_s17, %s1274_s29, %s1275_s3, %s1276_s5  }
  0x27   : > { %s1436_s6 = sand.u32 (!%p1399_p13), 1, %s1263_s10  }
  0x28   : > { %s968_s7 = smul.u32 (!%p1399_p13), 36, %s1436_s6  ;;  %s148_s8 = scalar_lea.sflag (!%p1399_p13), [#allocation3], %s1436_s6 }
  0x2a   : > { %s1440_s24 = scalar_lea.vmem [#allocation2], %s968_s7 }
  0x2b   : > { %1246 = dma.done.wait (%p1384_p6), %s148_s8, 576  }
  0x2c   : > { %1248 = vsyncadd (%p1384_p6), %s148_s8, 4294966720 }
  0x2d   : > { %1250 = dma.done.wait (%p40_p4), [#allocation6], 128  }
  0x2e   : > { %1252 = vsyncadd (%p40_p4), [#allocation6], 4294967168  ;;  %v1277_v0 = vmov 1   ;;  %v1278_v1 = vmov 0   ;;  %v1279_v2 = vmov 2   ;;  %v1450_v3 = vld [vmem:[#allocation5] sm:$0xff] }
  0x2f   : > { %1079 = vset.pattern.permute.xlu1 %v1277_v0  ;;  %1077 = vset.pattern.permute.xlu0 %v1278_v1  ;;  %v1280_v4 = vmov 5   ;;  %v1281_v5 = vmov 4   ;;  %v1282_v6 = vmov 6   ;;  %v1283_v7 = vmov 3   ;;  %v1481_v29 = vld [vmem:[%s1440_s24] sm:$0xf] }
  0x30   : > { %1081 = vset.pattern.permute.xlu2 %v1279_v2  ;;  %193 = vperm.xlu1 %1079, %v1450_v3   ;;  %v1284_v8 = vmov 8   ;;  %v1285_v9 = vmov 7   ;;  %v1286_v10 = vmov 9   ;;  %v1287_v11 = vmov 13   ;;  %v1497_v38 = vld [vmem:[%s1440_s24 + $0x4] sm:$0xf] }
  0x31   : > { %182 = vperm.xlu0 %1077, %v1450_v3   ;;  %206 = vperm.xlu2 %1081, %v1450_v3   ;;  %v1288_v12 = vmov 10   ;;  %v1289_v13 = vmov 11   ;;  %v1290_v14 = vmov 18   ;;  %v1291_v15 = vmov 12   ;;  %v1500_v39 = vld [vmem:[%s1440_s24 + $0x8] sm:$0xf] }
  0x32   : > { %v1292_v16 = vmov 14   ;;  %v1293_v17 = vmov 23   ;;  %v1294_v18 = vmov 15   ;;  %v1295_v19 = vmov 16   ;;  %v1504_v41 = vld [vmem:[%s1440_s24 + $0xc] sm:$0xf] }
  0x33   : > { %v1296_v20 = vmov 17   ;;  %v1297_v21 = vmov 28   ;;  %v1298_v22 = vmov 19   ;;  %v1299_v23 = vmov 20   ;;  %v1510_v45 = vld [vmem:[%s1440_s24 + $0x10] sm:$0xf] }
  0x34   : > { %v1300_v24 = vmov 21   ;;  %v1301_v25 = vmov 22   ;;  %v1302_v26 = vmov 33   ;;  %v1303_v27 = vmov 24   ;;  %v1516_v50 = vld [vmem:[%s1440_s24 + $0x14] sm:$0xf] }
  0x35   : > { %v1304_v28 = vmov 25   ;;  %v209_v30 = vperm.slane %v1481_v29, 2  ;;  %v1305_v31 = vmov 26   ;;  %v1306_v33 = vmov 27   ;;  %v1522_v53 = vld [vmem:[%s1440_s24 + $0x18] sm:$0xf] }
  0x36   : > { %v1307_v35 = vmov 38   ;;  %v1308_v36 = vmov 29   ;;  %v1309_v37 = vmov 30   ;;  %v196_v40 = vperm.slane %v1481_v29, 1  ;;  %v1525_v54 = vld [vmem:[%s1440_s24 + $0x1c] sm:$0xf] }
  0x37   : > { %v185_v42 = vperm.slane %v1481_v29, 0  ;;  %v233_v43 = vperm.slane %v1497_v38, 0  ;;  %v241_v44 = vperm.slane %v1497_v38, 1  ;;  %v1310_v46 = vmov 31   ;;  %v1532_v60 = vld [vmem:[%s1440_s24 + $0x20] sm:$0xf] }
  0x38   : > { %1080 = vset.pattern.permute.xlu1 %v1280_v4  ;;  %v250_v47 = vperm.slane %v1497_v38, 2  ;;  %v270_v48 = vperm.slane %v1500_v39, 0  ;;  %v278_v49 = vperm.slane %v1500_v39, 1  ;;  %v307_v51 = vperm.slane %v1504_v41, 0  ;;  %s969_s20 = smul.u32 72, %s1436_s6  ;;  %s964_s30 = sshll.u32 %s1360_s13, 3 }
  0x39   : > { %1078 = vset.pattern.permute.xlu0 %v1281_v5  ;;  %199 = vperm.xlu1 %1080, %v1450_v3   ;;  %v315_v52 = vperm.slane %v1504_v41, 1  ;;  %v1311_v55 = vmov 32   ;;  %v287_v56 = vperm.slane %v1500_v39, 2  ;;  %v324_v57 = vperm.slane %v1504_v41, 2  ;;  %s854_s17 = scalar_lea.hbm %s2060_s2, %s964_s30  ;;  %s844_s13 = scalar_lea.sflag [#allocation4], %s1436_s6 }
  0x3a   : > { %188 = vperm.xlu0 %1078, %v1450_v3   ;;  %1082 = vset.pattern.permute.xlu2 %v1282_v6  ;;  %v344_v58 = vperm.slane %v1510_v45, 0  ;;  %v352_v59 = vperm.slane %v1510_v45, 1  ;;  %v361_v61 = vperm.slane %v1510_v45, 2  ;;  %v381_v62 = vperm.slane %v1516_v50, 0  ;;  %s2011_s23 = scalar_lea.vmem [#allocation7], %s969_s20  ;;  %s857_s25 = sshll.u32 %s854_s17, 4  ;;  %s858_s25 = int_to_ptr.hbm [resolvable:$true] %s857_s25 }
  0x3b   : > { %212 = vperm.xlu2 %1082, %v1450_v3   ;;  %v389_v63 = vperm.slane %v1516_v50, 1  ;;  %v2061_v0 = vperm.slane %v1516_v50, 2  ;;  %v2070_v2 = vperm.slane %v1522_v53, 0  ;;  %v2069_v4 = vperm.slane %v1522_v53, 1  ;;  %s855_s19 = sshll.u32 %s2011_s23, 4  ;;  %s1215_s26 = sshra.s32 %s858_s25, 4  ;;  %s856_s19 = int_to_ptr.vmem [resolvable:$true] %s855_s19  ;;  %s1216_s26 = int_to_ptr.hbm [resolvable:$true] %s1215_s26 }
  0x3c   : > { %v2067_v5 = vperm.slane %v1525_v54, 0  ;;  %v2063_v6 = vperm.slane %v1525_v54, 1  ;;  %s1217_s27 = scalar_lea.hbm %s1216_s26, 72  ;;  %s1221_s29 = scalar_lea.hbm %s2060_s2, 144 }
  0x3d   : > { %p1218_p4 = scmp.ne.s32.totalorder %s1216_s26, %s1217_s27  ;;  %p1222_p0 = scmp.lt.s32.totalorder %s1216_s26, %s2060_s2 }
  0x3e   : > { %p1223_p7 = scmp.lt.s32.totalorder %s1221_s29, %s1217_s27 }
  0x3f   : > { %p1219_p6 = pnand %p1218_p4, %p1391_p11 }
  0x40   : > { %p1224_p5 = por %p1223_p7, %p1222_p0 }
  0x41   : > { %1083 = vset.pattern.permute.xlu1 %v1283_v7  ;;  %v2068_v7 = vperm.slane %v1522_v53, 2  ;;  %p1220_p13 = pneg %p1219_p6 }
  0x42   : > { %1085 = vset.pattern.permute.xlu0 %v1284_v8  ;;  %219 = vperm.xlu1 %1083, %v1450_v3   ;;  %v2062_v8 = vperm.slane %v1525_v54, 2 }
  0x43   : > { %236 = vperm.xlu0 %1085, %v1450_v3   ;;  %1084 = vset.pattern.permute.xlu2 %v1285_v9  ;;  %v2066_v9 = vperm.slane %v1532_v60, 0  ;;  %p1225_p8 = pnand %p1224_p5, %p1220_p13 }
  0x44   : > { %225 = vperm.xlu2 %1084, %v1450_v3  }
  0x4a   : > { %1086 = vset.pattern.permute.xlu1 %v1286_v10  ;;  %v2064_v10 = vperm.slane %v1532_v60, 1 }
  0x4b   : > { %1090 = vset.pattern.permute.xlu0 %v1287_v11  ;;  %244 = vperm.xlu1 %1086, %v1450_v3  }
  0x4c   : > { %281 = vperm.xlu0 %1090, %v1450_v3   ;;  %1087 = vset.pattern.permute.xlu2 %v1288_v12 }
  0x4d   : > { %253 = vperm.xlu2 %1087, %v1450_v3  }
  0x53   : > { %1088 = vset.pattern.permute.xlu1 %v1289_v13  ;;  %v2065_v13 = vperm.slane %v1532_v60, 2 }
  0x54   : > { %1095 = vset.pattern.permute.xlu0 %v1290_v14  ;;  %262 = vperm.xlu1 %1088, %v1450_v3  }
  0x55   : > { %327 = vperm.xlu0 %1095, %v1450_v3   ;;  %1089 = vset.pattern.permute.xlu2 %v1291_v15 }
  0x56   : > { %273 = vperm.xlu2 %1089, %v1450_v3  }
  0x5c   : > { %1091 = vset.pattern.permute.xlu1 %v1292_v16 }
  0x5d   : > { %1100 = vset.pattern.permute.xlu0 %v1293_v17  ;;  %290 = vperm.xlu1 %1091, %v1450_v3  }
  0x5e   : > { %373 = vperm.xlu0 %1100, %v1450_v3   ;;  %1092 = vset.pattern.permute.xlu2 %v1294_v18 }
  0x5f   : > { %299 = vperm.xlu2 %1092, %v1450_v3  }
  0x65   : > { %1093 = vset.pattern.permute.xlu1 %v1295_v19 }
  0x66   : > { %310 = vperm.xlu1 %1093, %v1450_v3   ;;  %1105 = vset.pattern.permute.xlu0 %v1297_v21 }
  0x67   : > { %1094 = vset.pattern.permute.xlu2 %v1296_v20  ;;  %421 = vperm.xlu0 %1105, %v1450_v3  }
  0x68   : > { %318 = vperm.xlu2 %1094, %v1450_v3  }
  0x6e   : > { %1096 = vset.pattern.permute.xlu1 %v1298_v22 }
  0x6f   : > { %336 = vperm.xlu1 %1096, %v1450_v3   ;;  %1110 = vset.pattern.permute.xlu0 %v1302_v26 }
  0x70   : > { %1097 = vset.pattern.permute.xlu2 %v1299_v23  ;;  %466 = vperm.xlu0 %1110, %v1450_v3   ;;  %v1312_v23 = vmov 34  }
  0x71   : > { %347 = vperm.xlu2 %1097, %v1450_v3  }
  0x77   : > { %1098 = vset.pattern.permute.xlu1 %v1300_v24 }
  0x78   : > { %355 = vperm.xlu1 %1098, %v1450_v3   ;;  %1115 = vset.pattern.permute.xlu0 %v1307_v35 }
  0x79   : > { %1099 = vset.pattern.permute.xlu2 %v1301_v25  ;;  %512 = vperm.xlu0 %1115, %v1450_v3  }
  0x7a   : > { %364 = vperm.xlu2 %1099, %v1450_v3  }
  0x80   : > { %1101 = vset.pattern.permute.xlu1 %v1303_v27 }
  0x81   : > { %384 = vperm.xlu1 %1101, %v1450_v3  }
  0x82   : > { %1102 = vset.pattern.permute.xlu2 %v1304_v28 }
  0x83   : > { %392 = vperm.xlu2 %1102, %v1450_v3  }
  0x89   : > { %1103 = vset.pattern.permute.xlu1 %v1305_v31 }
  0x8a   : > { %401 = vperm.xlu1 %1103, %v1450_v3  }
  0x8b   : > { %v1485_v32 = vpop.permute.xlu2 %206  ;;  %1104 = vset.pattern.permute.xlu2 %v1306_v33 }
  0x8c   : > { %410 = vperm.xlu2 %1104, %v1450_v3   ;;  %v1491_v34 = vmul.f32 %v209_v30, %v1485_v32  ;;  %v251_v11 = vmul.f32 %v250_v47, %v1485_v32  ;;  %v288_v12 = vmul.f32 %v287_v56, %v1485_v32  ;;  %v325_v16 = vmul.f32 %v324_v57, %v1485_v32 }
  0x8d   : > { %v362_v17 = vmul.f32 %v361_v61, %v1485_v32  ;;  %v399_v18 = vmul.f32 %v2061_v0, %v1485_v32 }
  0x92   : > { %1106 = vset.pattern.permute.xlu1 %v1308_v36  ;;  %v1313_v36 = vmov 35  }
  0x93   : > { %429 = vperm.xlu1 %1106, %v1450_v3  }
  0x94   : > { %1107 = vset.pattern.permute.xlu2 %v1309_v37 }
  0x95   : > { %438 = vperm.xlu2 %1107, %v1450_v3   ;;  %v1539_v1 = vpop.permute.xlu2 %212 }
  0x9b   : > { %1108 = vset.pattern.permute.xlu1 %v1310_v46 }
  0x9c   : > { %447 = vperm.xlu1 %1108, %v1450_v3  }
  0x9d   : > { %1109 = vset.pattern.permute.xlu2 %v1311_v55 }
  0x9e   : > { %458 = vperm.xlu2 %1109, %v1450_v3  }
  0xa2   : > { %v194_v14 = vpop.permute.xlu1 %193 }
  0xa3   : > { %v183_v15 = vpop.permute.xlu0 %182  ;;  %v197_v19 = vmul.f32 %v196_v40, %v194_v14  ;;  %v242_v22 = vmul.f32 %v241_v44, %v194_v14  ;;  %v279_v25 = vmul.f32 %v278_v49, %v194_v14  ;;  %v316_v27 = vmul.f32 %v315_v52, %v194_v14 }
  0xa4   : > { %v186_v20 = vmul.f32 %v185_v42, %v183_v15  ;;  %v234_v21 = vmul.f32 %v233_v43, %v183_v15  ;;  %1111 = vset.pattern.permute.xlu1 %v1312_v23  ;;  %v271_v24 = vmul.f32 %v270_v48, %v183_v15  ;;  %v308_v26 = vmul.f32 %v307_v51, %v183_v15 }
  0xa5   : > { %475 = vperm.xlu1 %1111, %v1450_v3   ;;  %v345_v33 = vmul.f32 %v344_v58, %v183_v15  ;;  %v353_v35 = vmul.f32 %v352_v59, %v194_v14  ;;  %v382_v55 = vmul.f32 %v381_v62, %v183_v15  ;;  %v436_v23 = vmul.f32 %v2068_v7, %v1485_v32 }
  0xa6   : > { %v203_v28 = vadd.f32 %v197_v19, %v186_v20  ;;  %v248_v31 = vadd.f32 %v242_v22, %v234_v21  ;;  %1112 = vset.pattern.permute.xlu2 %v1313_v36  ;;  %v285_v37 = vadd.f32 %v279_v25, %v271_v24  ;;  %v322_v46 = vadd.f32 %v316_v27, %v308_v26  ;;  %v1600_v26 = vpop.permute.xlu2 %225 }
  0xa7   : > { %484 = vperm.xlu2 %1112, %v1450_v3   ;;  %v359_v21 = vadd.f32 %v353_v35, %v345_v33  ;;  %v390_v22 = vmul.f32 %v389_v63, %v194_v14  ;;  %v419_v24 = vmul.f32 %v2070_v2, %v183_v15  ;;  %v473_v25 = vmul.f32 %v2062_v8, %v1485_v32 }
  0xa8   : > { %v216_v19 = vadd.f32 %v1491_v34, %v203_v28  ;;  %v257_v20 = vadd.f32 %v251_v11, %v248_v31  ;;  %v294_v0 = vadd.f32 %v288_v12, %v285_v37  ;;  %v331_v36 = vadd.f32 %v325_v16, %v322_v46 }
  0xa9   : > { %v368_v27 = vadd.f32 %v362_v17, %v359_v21  ;;  %v396_v34 = vadd.f32 %v390_v22, %v382_v55  ;;  %v427_v11 = vmul.f32 %v2069_v4, %v194_v14  ;;  %v456_v28 = vmul.f32 %v2067_v5, %v183_v15 }
  0xaa   : > { %v464_v12 = vmul.f32 %v2063_v6, %v194_v14  ;;  %v493_v16 = vmul.f32 %v2066_v9, %v183_v15  ;;  %v501_v31 = vmul.f32 %v2064_v10, %v194_v14  ;;  %v510_v17 = vmul.f32 %v2065_v13, %v1485_v32 }
  0xab   : > { %v200_v33 = vpop.permute.xlu1 %199  ;;  %v405_v35 = vadd.f32 %v399_v18, %v396_v34  ;;  %v433_v37 = vadd.f32 %v427_v11, %v419_v24  ;;  %v1314_v21 = vmov 36   ;;  %v1315_v15 = vmov 37  }
  0xac   : > { %v470_v46 = vadd.f32 %v464_v12, %v456_v28  ;;  %v507_v55 = vadd.f32 %v501_v31, %v493_v16  ;;  %v259_v10 = vperm.slane %v1497_v38, 3  ;;  %v296_v32 = vperm.slane %v1500_v39, 3 }
  0xad   : > { %1113 = vset.pattern.permute.xlu1 %v1314_v21  ;;  %v442_v22 = vadd.f32 %v436_v23, %v433_v37  ;;  %v333_v18 = vperm.slane %v1504_v41, 3  ;;  %v370_v24 = vperm.slane %v1510_v45, 3  ;;  %v2071_v34 = vperm.slane %v1516_v50, 3 }
  0xae   : > { %495 = vperm.xlu1 %1113, %v1450_v3   ;;  %v479_v8 = vadd.f32 %v473_v25, %v470_v46  ;;  %v516_v6 = vadd.f32 %v510_v17, %v507_v55  ;;  %v254_v14 = vpop.permute.xlu2 %253  ;;  %v444_v23 = vperm.slane %v1522_v53, 3  ;;  %v222_v25 = vperm.slane %v1481_v29, 3 }
  0xaf   : > { %1114 = vset.pattern.permute.xlu2 %v1315_v15  ;;  %v481_v28 = vperm.slane %v1525_v54, 3  ;;  %v518_v12 = vperm.slane %v1532_v60, 3  ;;  %v1316_v37 = vmov 39   ;;  %v256_v29 = vmul.f32 %v254_v14, %v250_v47 }
  0xb0   : > { %503 = vperm.xlu2 %1114, %v1450_v3  }
  0xb4   : > { %v220_v11 = vpop.permute.xlu1 %219 }
  0xb5   : > { %v223_v16 = vmul.f32 %v222_v25, %v220_v11  ;;  %v260_v31 = vmul.f32 %v259_v10, %v220_v11  ;;  %v297_v17 = vmul.f32 %v296_v32, %v220_v11  ;;  %v334_v46 = vmul.f32 %v333_v18, %v220_v11 }
  0xb6   : > { %1116 = vset.pattern.permute.xlu1 %v1316_v37  ;;  %v371_v55 = vmul.f32 %v370_v24, %v220_v11  ;;  %v408_v21 = vmul.f32 %v2071_v34, %v220_v11  ;;  %v445_v15 = vmul.f32 %v444_v23, %v220_v11  ;;  %v1317_v37 = vmov 40  }
  0xb7   : > { %v1636_v13 = vadd.f32 %v223_v16, %v216_v19  ;;  %521 = vperm.xlu1 %1116, %v1450_v3   ;;  %v1639_v9 = vadd.f32 %v260_v31, %v257_v20  ;;  %v1641_v5 = vadd.f32 %v297_v17, %v294_v0  ;;  %v1643_v7 = vadd.f32 %v334_v46, %v331_v36  ;;  %v189_v0 = vpop.permute.xlu0 %188  ;;  %v274_v16 = vpop.permute.xlu2 %273 }
  0xb8   : > { %1117 = vset.pattern.permute.xlu2 %v1317_v37  ;;  %v1645_v4 = vadd.f32 %v371_v55, %v368_v27  ;;  %v1647_v2 = vadd.f32 %v408_v21, %v405_v35  ;;  %v1649_v34 = vadd.f32 %v445_v15, %v442_v22  ;;  %v482_v19 = vmul.f32 %v481_v28, %v220_v11 }
  0xb9   : > { %528 = vperm.xlu2 %1117, %v1450_v3   ;;  %v519_v20 = vmul.f32 %v518_v12, %v220_v11  ;;  %v202_v27 = vmul.f32 %v200_v33, %v196_v40  ;;  %v191_v35 = vmul.f32 %v189_v0, %v185_v42  ;;  %v215_v17 = vmul.f32 %v1539_v1, %v209_v30 }
  0xba   : > { %v1656_v31 = vadd.f32 %v482_v19, %v479_v8  ;;  %v228_v21 = vmul.f32 %v1600_v26, %v222_v25  ;;  %v276_v26 = vmul.f32 %v274_v16, %v270_v48 }
  0xbb   : > { %v1658_v36 = vadd.f32 %v519_v20, %v516_v6  ;;  %v204_v46 = vadd.f32 %v202_v27, %v191_v35  ;;  %v1318_v35 = vmov 41  }
  0xbd   : > { %v245_v22 = vpop.permute.xlu1 %244  ;;  %v217_v11 = vadd.f32 %v215_v17, %v204_v46 }
  0xbe   : > { %v247_v40 = vmul.f32 %v245_v22, %v241_v44 }
  0xbf   : > { %v237_v55 = vpop.permute.xlu0 %236  ;;  %v300_v8 = vpop.permute.xlu2 %299  ;;  %v230_v37 = vadd.f32 %v228_v21, %v217_v11  ;;  %1118 = vset.pattern.permute.xlu1 %v1318_v35 }
  0xc0   : > { %v239_v6 = vmul.f32 %v237_v55, %v233_v43  ;;  %569 = vperm.xlu1 %1118, %v1450_v3   ;;  %v302_v22 = vmul.f32 %v300_v8, %v296_v32  ;;  %v1319_v8 = vmov 42  }
  0xc1   : > { %1119 = vset.pattern.permute.xlu2 %v1319_v8  ;;  %1120 = vset.pattern.permute.xlu0 %v1319_v8 }
  0xc2   : > { %v240_v42 = vadd.f32 %v239_v6, %v230_v37  ;;  %574 = vperm.xlu2 %1119, %v1450_v3  }
  0xc4   : > { %v249_v33 = vadd.f32 %v247_v40, %v240_v42 }
  0xc6   : > { %v263_v15 = vpop.permute.xlu1 %262  ;;  %v258_v20 = vadd.f32 %v256_v29, %v249_v33 }
  0xc7   : > { %v265_v30 = vmul.f32 %v263_v15, %v259_v10  ;;  %v319_v19 = vpop.permute.xlu2 %318  ;;  %v282_v25 = vpop.permute.xlu0 %281 }
  0xc8   : > { %v284_v43 = vmul.f32 %v282_v25, %v278_v49  ;;  %v321_v46 = vmul.f32 %v319_v19, %v315_v52 }
  0xc9   : > { %v267_v0 = vadd.f32 %v265_v30, %v258_v20  ;;  %v2078_v20 = vperm.slane %v1516_v50, 2 }
  0xcb   : > { %v277_v27 = vadd.f32 %v276_v26, %v267_v0 }
  0xcd   : > { %v286_v10 = vadd.f32 %v284_v43, %v277_v27  ;;  %v2079_v27 = vperm.slane %v1516_v50, 3 }
  0xcf   : > { %v291_v1 = vpop.permute.xlu1 %290  ;;  %v348_v47 = vpop.permute.xlu2 %347 }
  0xd0   : > { %v293_v38 = vmul.f32 %v291_v1, %v287_v56  ;;  %v328_v11 = vpop.permute.xlu0 %327  ;;  %v350_v52 = vmul.f32 %v348_v47, %v344_v58 }
  0xd1   : > { %v330_v56 = vmul.f32 %v328_v11, %v324_v57 }
  0xd2   : > { %v295_v14 = vadd.f32 %v293_v38, %v286_v10  ;;  %v2081_v38 = vperm.slane %v1522_v53, 1 }
  0xd4   : > { %v304_v16 = vadd.f32 %v302_v22, %v295_v14  ;;  %v2082_v22 = vperm.slane %v1522_v53, 2 }
  0xd7   : > { %v365_v55 = vpop.permute.xlu2 %364 }
  0xd8   : > { %v311_v44 = vpop.permute.xlu1 %310  ;;  %v367_v41 = vmul.f32 %v365_v55, %v361_v61  ;;  %v374_v42 = vpop.permute.xlu0 %373 }
  0xd9   : > { %v313_v48 = vmul.f32 %v311_v44, %v307_v51  ;;  %v376_v29 = vmul.f32 %v374_v42, %v370_v24  ;;  %v2086_v42 = vperm.slane %v1532_v60, 0 }
  0xdb   : > { %v314_v49 = vadd.f32 %v313_v48, %v304_v16 }
  0xdd   : > { %v323_v21 = vadd.f32 %v321_v46, %v314_v49  ;;  %v2083_v46 = vperm.slane %v1525_v54, 0 }
  0xdf   : > { %v332_v32 = vadd.f32 %v330_v56, %v323_v21  ;;  %v393_v6 = vpop.permute.xlu2 %392  ;;  %v1320_v56 = vmov 8.0  }
  0xe0   : > { %v422_v24 = vpop.permute.xlu0 %421  ;;  %1121 = vrcp.f32 %v1320_v56 }
  0xe1   : > { %v337_v17 = vpop.permute.xlu1 %336 }
  0xe2   : > { %v339_v15 = vmul.f32 %v337_v17, %v333_v18 }
  0xe4   : > { %v341_v51 = vadd.f32 %v339_v15, %v332_v32 }
  0xe6   : > { %v351_v40 = vadd.f32 %v350_v52, %v341_v51  ;;  %v2085_v51 = vperm.slane %v1525_v54, 2 }
  0xe7   : > { %v411_v3 = vpop.permute.xlu2 %410 }
  0xe8   : > { %v413_v45 = vmul.f32 %v411_v3, %v2079_v27  ;;  %v467_v11 = vpop.permute.xlu0 %466 }
  0xea   : > { %v356_v39 = vpop.permute.xlu1 %355 }
  0xeb   : > { %v358_v37 = vmul.f32 %v356_v39, %v352_v59  ;;  %v395_v59 = vmul.f32 %v393_v6, %v389_v63  ;;  %v2084_v39 = vperm.slane %v1525_v54, 1 }
  0xed   : > { %v360_v57 = vadd.f32 %v358_v37, %v351_v40  ;;  %v469_v32 = vmul.f32 %v467_v11, %v2084_v39 }
  0xef   : > { %v369_v33 = vadd.f32 %v367_v41, %v360_v57  ;;  %v439_v26 = vpop.permute.xlu2 %438 }
  0xf0   : > { %v441_v48 = vmul.f32 %v439_v26, %v2082_v22 }
  0xf1   : > { %v378_v58 = vadd.f32 %v376_v29, %v369_v33  ;;  %v2087_v29 = vperm.slane %v1532_v60, 1 }
  0xf3   : > { %v385_v18 = vpop.permute.xlu1 %384 }
  0xf4   : > { %v387_v30 = vmul.f32 %v385_v18, %v381_v62  ;;  %v2080_v62 = vperm.slane %v1522_v53, 0  ;;  %v1122_v53 = vpop.eup %1121 }
  0xf5   : > { %v540_v57 = vmul.f32 8.0, %v1122_v53  ;;  %vm544_vm0 = vweird.f32 %v1122_v53 }
  0xf6   : > { %v388_v19 = vadd.f32 %v387_v30, %v378_v58  ;;  %v424_v44 = vmul.f32 %v422_v24, %v2080_v62  ;;  %v513_v58 = vpop.permute.xlu0 %512 }
  0xf8   : > { %v397_v61 = vadd.f32 %v395_v59, %v388_v19  ;;  %v459_v63 = vpop.permute.xlu2 %458  ;;  %v2088_v59 = vperm.slane %v1532_v60, 2 }
  0xf9   : > { %v461_v55 = vmul.f32 %v459_v63, %v2083_v46 }
  0xfc   : > { %v402_v1 = vpop.permute.xlu1 %401 }
  0xfd   : > { %v404_v0 = vmul.f32 %v402_v1, %v2078_v20  ;;  %v541_v1 = vsub.f32 1.0, %v540_v57  ;;  %v515_v20 = vmul.f32 %v513_v58, %v2088_v59 }
  0xff   : > { %v406_v25 = vadd.f32 %v404_v0, %v397_v61  ;;  %v542_v0 = vmul.f32 %v1122_v53, %v541_v1 }
 0x101   : > { %v415_v35 = vadd.f32 %v413_v45, %v406_v25  ;;  %v485_v21 = vpop.permute.xlu2 %484  ;;  %v543_v25 = vadd.f32 %v1122_v53, %v542_v0 }
 0x102   : > { %v487_v37 = vmul.f32 %v485_v21, %v481_v28 }
 0x103   : > { %v425_v10 = vadd.f32 %v424_v44, %v415_v35  ;;  %v1734_v24 = vsel %vm544_vm0, %v1122_v53, %v543_v25 }
 0x105   : > { %v430_v43 = vpop.permute.xlu1 %429 }
 0x106   : > { %v432_v47 = vmul.f32 %v430_v43, %v2081_v38 }
 0x108   : > { %v434_v14 = vadd.f32 %v432_v47, %v425_v10 }
 0x10a   : > { %v443_v17 = vadd.f32 %v441_v48, %v434_v14  ;;  %v504_v40 = vpop.permute.xlu2 %503 }
 0x10b   : > { %v506_v3 = vmul.f32 %v504_v40, %v2087_v29 }
 0x10e   : > { %v448_v16 = vpop.permute.xlu1 %447 }
 0x10f   : > { %v450_v50 = vmul.f32 %v448_v16, %v444_v23 }
 0x111   : > { %v452_v49 = vadd.f32 %v450_v50, %v443_v17 }
 0x113   : > { %v462_v15 = vadd.f32 %v461_v55, %v452_v49  ;;  %v529_v26 = vpop.permute.xlu2 %528 }
 0x115   : > { %v471_v6 = vadd.f32 %v469_v32, %v462_v15 }
 0x117   : > { %v476_v8 = vpop.permute.xlu1 %475 }
 0x118   : > { %v478_v52 = vmul.f32 %v476_v8, %v2085_v51 }
 0x11a   : > { %v480_v23 = vadd.f32 %v478_v52, %v471_v6 }
 0x11c   : > { %v489_v18 = vadd.f32 %v487_v37, %v480_v23 }
 0x120   : > { %v496_v41 = vpop.permute.xlu1 %495 }
 0x121   : > { %v498_v33 = vmul.f32 %v496_v41, %v2086_v42 }
 0x123   : > { %v499_v30 = vadd.f32 %v498_v33, %v489_v18 }
 0x125   : > { %v508_v19 = vadd.f32 %v506_v3, %v499_v30 }
 0x127   : > { %v517_v28 = vadd.f32 %v515_v20, %v508_v19 }
 0x129   : > { %v522_v54 = vpop.permute.xlu1 %521 }
 0x12a   : > { %v524_v61 = vmul.f32 %v522_v54, %v518_v12 }
 0x12c   : > { %v526_v27 = vadd.f32 %v524_v61, %v517_v28 }
 0x12e   : > { %v1732_v45 = vadd.f32 %v529_v26, %v526_v27 }
 0x130   : > { %v1738_v43 = vadd.f32 %v1732_v45, %v1636_v13  ;;  %v1742_v35 = vadd.f32 %v1732_v45, %v1639_v9  ;;  %v1746_v60 = vadd.f32 %v1732_v45, %v1641_v5  ;;  %v1750_v12 = vadd.f32 %v1732_v45, %v1643_v7 }
 0x131   : > { %v1754_v62 = vadd.f32 %v1732_v45, %v1645_v4  ;;  %v1758_v13 = vadd.f32 %v1732_v45, %v1647_v2  ;;  %v1762_v9 = vadd.f32 %v1732_v45, %v1649_v34  ;;  %v1766_v5 = vadd.f32 %v1732_v45, %v1656_v31 }
 0x132   : > { %v533_v44 = vrot.slane %v1738_v43, 4  ;;  %v580_v7 = vrot.slane %v1742_v35, 4  ;;  %v613_v38 = vrot.slane %v1746_v60, 4  ;;  %v646_v4 = vrot.slane %v1750_v12, 4 }
 0x133   : > { %v679_v47 = vrot.slane %v1754_v62, 4  ;;  %v712_v2 = vrot.slane %v1758_v13, 4  ;;  %v745_v10 = vrot.slane %v1762_v9, 4  ;;  %v778_v34 = vrot.slane %v1766_v5, 4 }
 0x134   : > { %v534_v63 = vadd.f32 %v533_v44, %v1738_v43  ;;  %v581_v31 = vadd.f32 %v580_v7, %v1742_v35  ;;  %v614_v14 = vadd.f32 %v613_v38, %v1746_v60  ;;  %v647_v22 = vadd.f32 %v646_v4, %v1750_v12 }
 0x135   : > { %v680_v48 = vadd.f32 %v679_v47, %v1754_v62  ;;  %v713_v16 = vadd.f32 %v712_v2, %v1758_v13  ;;  %v746_v50 = vadd.f32 %v745_v10, %v1762_v9  ;;  %v779_v17 = vadd.f32 %v778_v34, %v1766_v5 }
 0x136   : > { %v535_v49 = vrot.slane %v534_v63, 2  ;;  %v582_v46 = vrot.slane %v581_v31, 2  ;;  %v615_v55 = vrot.slane %v614_v14, 2  ;;  %v648_v11 = vrot.slane %v647_v22, 2 }
 0x137   : > { %v681_v21 = vrot.slane %v680_v48, 2  ;;  %v714_v56 = vrot.slane %v713_v16, 2  ;;  %v747_v15 = vrot.slane %v746_v50, 2  ;;  %v780_v39 = vrot.slane %v779_v17, 2 }
 0x138   : > { %v536_v32 = vadd.f32 %v535_v49, %v534_v63  ;;  %v583_v8 = vadd.f32 %v582_v46, %v581_v31  ;;  %v616_v51 = vadd.f32 %v615_v55, %v614_v14  ;;  %v649_v52 = vadd.f32 %v648_v11, %v647_v22 }
 0x139   : > { %v682_v6 = vadd.f32 %v681_v21, %v680_v48  ;;  %v715_v53 = vadd.f32 %v714_v56, %v713_v16  ;;  %v748_v23 = vadd.f32 %v747_v15, %v746_v50  ;;  %v781_v37 = vadd.f32 %v780_v39, %v779_v17 }
 0x13a   : > { %v537_v40 = vrot.slane %v536_v32, 1  ;;  %v584_v57 = vrot.slane %v583_v8, 1  ;;  %v617_v41 = vrot.slane %v616_v51, 1  ;;  %v650_v18 = vrot.slane %v649_v52, 1 }
 0x13b   : > { %v683_v42 = vrot.slane %v682_v6, 1  ;;  %v716_v33 = vrot.slane %v715_v53, 1  ;;  %v749_v29 = vrot.slane %v748_v23, 1  ;;  %v782_v3 = vrot.slane %v781_v37, 1 }
 0x13c   : > { %v538_v30 = vadd.f32 %v537_v40, %v536_v32  ;;  %v585_v58 = vadd.f32 %v584_v57, %v583_v8  ;;  %v618_v1 = vadd.f32 %v617_v41, %v616_v51  ;;  %v651_v19 = vadd.f32 %v650_v18, %v649_v52 }
 0x13d   : > { %v684_v59 = vadd.f32 %v683_v42, %v682_v6  ;;  %v717_v20 = vadd.f32 %v716_v33, %v715_v53  ;;  %v750_v0 = vadd.f32 %v749_v29, %v748_v23  ;;  %v783_v54 = vadd.f32 %v782_v3, %v781_v37 }
 0x13e   : > { %v546_v28 = vmul.f32 %v1734_v24, %v538_v30  ;;  %v586_v61 = vmul.f32 %v585_v58, %v1734_v24  ;;  %v619_v26 = vmul.f32 %v618_v1, %v1734_v24  ;;  %v652_v25 = vmul.f32 %v651_v19, %v1734_v24 }
 0x13f   : > { %v685_v27 = vmul.f32 %v684_v59, %v1734_v24  ;;  %v718_v44 = vmul.f32 %v717_v20, %v1734_v24  ;;  %v751_v7 = vmul.f32 %v750_v0, %v1734_v24  ;;  %v784_v38 = vmul.f32 %v783_v54, %v1734_v24 }
 0x140   : > { %v1793_v4 = vsub.f32 %v1738_v43, %v546_v28  ;;  %v1796_v47 = vsub.f32 %v1742_v35, %v586_v61  ;;  %v1799_v2 = vsub.f32 %v1746_v60, %v619_v26  ;;  %v1802_v10 = vsub.f32 %v1750_v12, %v652_v25 }
 0x141   : > { %v1805_v34 = vsub.f32 %v1754_v62, %v685_v27  ;;  %v1808_v63 = vsub.f32 %v1758_v13, %v718_v44  ;;  %v1811_v31 = vsub.f32 %v1762_v9, %v751_v7  ;;  %v1814_v43 = vsub.f32 %v1766_v5, %v784_v38 }
 0x142   : > { %v548_v35 = vmul.f32 %v1793_v4, %v1793_v4  ;;  %v588_v60 = vmul.f32 %v1796_v47, %v1796_v47  ;;  %v621_v12 = vmul.f32 %v1799_v2, %v1799_v2  ;;  %v654_v62 = vmul.f32 %v1802_v10, %v1802_v10 }
 0x143   : > { %v687_v13 = vmul.f32 %v1805_v34, %v1805_v34  ;;  %v720_v9 = vmul.f32 %v1808_v63, %v1808_v63  ;;  %v753_v5 = vmul.f32 %v1811_v31, %v1811_v31  ;;  %v786_v14 = vmul.f32 %v1814_v43, %v1814_v43 }
 0x144   : > { %v549_v22 = vrot.slane %v548_v35, 4  ;;  %v589_v48 = vrot.slane %v588_v60, 4  ;;  %v622_v16 = vrot.slane %v621_v12, 4  ;;  %v655_v50 = vrot.slane %v654_v62, 4 }
 0x145   : > { %v688_v17 = vrot.slane %v687_v13, 4  ;;  %v721_v49 = vrot.slane %v720_v9, 4  ;;  %v754_v46 = vrot.slane %v753_v5, 4  ;;  %v787_v55 = vrot.slane %v786_v14, 4 }
 0x146   : > { %v550_v11 = vadd.f32 %v549_v22, %v548_v35  ;;  %v590_v21 = vadd.f32 %v589_v48, %v588_v60  ;;  %v623_v56 = vadd.f32 %v622_v16, %v621_v12  ;;  %v656_v15 = vadd.f32 %v655_v50, %v654_v62 }
 0x147   : > { %v689_v39 = vadd.f32 %v688_v17, %v687_v13  ;;  %v722_v32 = vadd.f32 %v721_v49, %v720_v9  ;;  %v755_v8 = vadd.f32 %v754_v46, %v753_v5  ;;  %v788_v51 = vadd.f32 %v787_v55, %v786_v14 }
 0x148   : > { %v551_v52 = vrot.slane %v550_v11, 2  ;;  %v591_v6 = vrot.slane %v590_v21, 2  ;;  %v624_v53 = vrot.slane %v623_v56, 2  ;;  %v657_v23 = vrot.slane %v656_v15, 2 }
 0x149   : > { %v690_v37 = vrot.slane %v689_v39, 2  ;;  %v723_v40 = vrot.slane %v722_v32, 2  ;;  %v756_v57 = vrot.slane %v755_v8, 2  ;;  %v789_v41 = vrot.slane %v788_v51, 2 }
 0x14a   : > { %v552_v18 = vadd.f32 %v551_v52, %v550_v11  ;;  %v592_v42 = vadd.f32 %v591_v6, %v590_v21  ;;  %v625_v33 = vadd.f32 %v624_v53, %v623_v56  ;;  %v658_v29 = vadd.f32 %v657_v23, %v656_v15 }
 0x14b   : > { %v691_v3 = vadd.f32 %v690_v37, %v689_v39  ;;  %v724_v30 = vadd.f32 %v723_v40, %v722_v32  ;;  %v757_v58 = vadd.f32 %v756_v57, %v755_v8  ;;  %v790_v1 = vadd.f32 %v789_v41, %v788_v51 }
 0x14c   : > { %v553_v19 = vrot.slane %v552_v18, 1  ;;  %v593_v59 = vrot.slane %v592_v42, 1  ;;  %v626_v20 = vrot.slane %v625_v33, 1  ;;  %v659_v0 = vrot.slane %v658_v29, 1 }
 0x14d   : > { %v692_v54 = vrot.slane %v691_v3, 1  ;;  %v725_v28 = vrot.slane %v724_v30, 1  ;;  %v758_v61 = vrot.slane %v757_v58, 1  ;;  %v791_v26 = vrot.slane %v790_v1, 1 }
 0x14e   : > { %v554_v25 = vadd.f32 %v553_v19, %v552_v18  ;;  %v594_v27 = vadd.f32 %v593_v59, %v592_v42  ;;  %v627_v44 = vadd.f32 %v626_v20, %v625_v33  ;;  %v660_v7 = vadd.f32 %v659_v0, %v658_v29 }
 0x14f   : > { %v693_v38 = vadd.f32 %v692_v54, %v691_v3  ;;  %v726_v35 = vadd.f32 %v725_v28, %v724_v30  ;;  %v759_v60 = vadd.f32 %v758_v61, %v757_v58  ;;  %v792_v22 = vadd.f32 %v791_v26, %v790_v1 }
 0x150   : > { %v555_v12 = vmul.f32 %v554_v25, %v1734_v24  ;;  %v595_v62 = vmul.f32 %v594_v27, %v1734_v24  ;;  %v628_v13 = vmul.f32 %v627_v44, %v1734_v24  ;;  %v661_v9 = vmul.f32 %v660_v7, %v1734_v24 }
 0x151   : > { %v694_v5 = vmul.f32 %v693_v38, %v1734_v24  ;;  %v727_v14 = vmul.f32 %v726_v35, %v1734_v24  ;;  %v760_v17 = vmul.f32 %v759_v60, %v1734_v24  ;;  %v1852_v55 = vadd.f32 %v1732_v45, %v1658_v36 }
 0x152   : > { %v1838_v48 = vadd.f32 1e-05, %v555_v12  ;;  %v1840_v16 = vadd.f32 1e-05, %v595_v62  ;;  %v1842_v50 = vadd.f32 1e-05, %v628_v13  ;;  %v793_v21 = vmul.f32 %v792_v22, %v1734_v24 }
 0x153   : > { %v1845_v49 = vadd.f32 1e-05, %v661_v9  ;;  %v1848_v46 = vadd.f32 1e-05, %v694_v5  ;;  %v1855_v11 = vadd.f32 1e-05, %v727_v14 }
 0x154   : > { %1123 = vrsqrt.f32 %v1838_v48  ;;  %v1859_v56 = vadd.f32 1e-05, %v760_v17  ;;  %v811_v15 = vrot.slane %v1852_v55, 4  ;;  %v1865_v36 = vadd.f32 1e-05, %v793_v21 }
 0x155   : > { %1125 = vrsqrt.f32 %v1840_v16  ;;  %vm563_vm1 = vweird.f32 %v1838_v48  ;;  %vm603_vm2 = vweird.f32 %v1840_v16  ;;  %vm636_vm3 = vweird.f32 %v1842_v50 }
 0x156   : > { %1127 = vrsqrt.f32 %v1842_v50  ;;  %v812_v52 = vadd.f32 %v811_v15, %v1852_v55  ;;  %vm669_vm5 = vweird.f32 %v1845_v49  ;;  %vm702_vm10 = vweird.f32 %v1848_v46 }
 0x157   : > { %1129 = vrsqrt.f32 %v1845_v49 }
 0x158   : > { %1131 = vrsqrt.f32 %v1848_v46  ;;  %v813_v30 = vrot.slane %v812_v52, 2 }
 0x159   : > { %1133 = vrsqrt.f32 %v1855_v11 }
 0x15a   : > { %v1867_v45 = vpop.eup %1123  ;;  %1135 = vrsqrt.f32 %v1859_v56  ;;  %v814_v25 = vadd.f32 %v813_v30, %v812_v52 }
 0x15b   : > { %v1870_v39 = vpop.eup %1125  ;;  %v558_v32 = vmul.f32 %v1867_v45, %v1838_v48  ;;  %1137 = vrsqrt.f32 %v1865_v36  ;;  %vm564_vm4 = vweird.f32 %v1867_v45 }
 0x15c   : > { %v1874_v8 = vpop.eup %1127  ;;  %v598_v51 = vmul.f32 %v1870_v39, %v1840_v16  ;;  %v815_v13 = vrot.slane %v814_v25, 1  ;;  %vm604_vm6 = vweird.f32 %v1870_v39  ;;  %vm1922_vm8 = vmor %vm563_vm1, %vm564_vm4 }
 0x15d   : > { %v1879_v6 = vpop.eup %1129  ;;  %v559_v53 = vmul.f32 %v1867_v45, %v558_v32  ;;  %v631_v23 = vmul.f32 %v1874_v8, %v1842_v50  ;;  %vm637_vm7 = vweird.f32 %v1874_v8  ;;  %vm1932_vm12 = vmor %vm603_vm2, %vm604_vm6  ;;  %vm735_vm2 = vweird.f32 %v1855_v11 }
 0x15e   : > { %v1885_v37 = vpop.eup %1131  ;;  %v599_v40 = vmul.f32 %v1870_v39, %v598_v51  ;;  %v664_v57 = vmul.f32 %v1879_v6, %v1845_v49  ;;  %vm670_vm9 = vweird.f32 %v1879_v6  ;;  %vm1948_vm14 = vmor %vm636_vm3, %vm637_vm7  ;;  %vm768_vm3 = vweird.f32 %v1859_v56 }
 0x15f   : > { %v1890_v41 = vpop.eup %1133  ;;  %v632_v18 = vmul.f32 %v1874_v8, %v631_v23  ;;  %v697_v42 = vmul.f32 %v1885_v37, %v1848_v46  ;;  %v560_v58 = vmul.f32 0.5, %v559_v53  ;;  %vm703_vm11 = vweird.f32 %v1885_v37  ;;  %vm1959_vm0 = vmor %vm669_vm5, %vm670_vm9 }
 0x160   : > { %v1895_v33 = vpop.eup %1135  ;;  %v665_v29 = vmul.f32 %v1879_v6, %v664_v57  ;;  %v730_v3 = vmul.f32 %v1890_v41, %v1855_v11  ;;  %v600_v1 = vmul.f32 0.5, %v599_v40  ;;  %vm736_vm13 = vweird.f32 %v1890_v41  ;;  %vm1972_vm1 = vmor %vm702_vm10, %vm703_vm11 }
 0x161   : > { %v698_v19 = vmul.f32 %v1885_v37, %v697_v42  ;;  %v763_v59 = vmul.f32 %v1895_v33, %v1859_v56  ;;  %v633_v20 = vmul.f32 0.5, %v632_v18  ;;  %v1904_v54 = vpop.eup %1137  ;;  %v561_v27 = vsub.f32 1.5, %v560_v58  ;;  %vm1984_vm5 = vmor %vm735_vm2, %vm736_vm13  ;;  %v570_v58 = vpop.permute.xlu1 %569 }
 0x162   : > { %v731_v0 = vmul.f32 %v1890_v41, %v730_v3  ;;  %v666_v28 = vmul.f32 0.5, %v665_v29  ;;  %v601_v44 = vsub.f32 1.5, %v600_v1  ;;  %v796_v60 = vmul.f32 %v1904_v54, %v1865_v36 }
 0x163   : > { %v764_v61 = vmul.f32 %v1895_v33, %v763_v59  ;;  %v699_v26 = vmul.f32 0.5, %v698_v19  ;;  %v634_v38 = vsub.f32 1.5, %v633_v20  ;;  %v562_v9 = vmul.f32 %v1867_v45, %v561_v27  ;;  %v575_v27 = vpop.permute.xlu2 %574 }
 0x164   : > { %v732_v7 = vmul.f32 0.5, %v731_v0  ;;  %v667_v12 = vsub.f32 1.5, %v666_v28  ;;  %v602_v5 = vmul.f32 %v1870_v39, %v601_v44  ;;  %v797_v21 = vmul.f32 %v1904_v54, %v796_v60 }
 0x165   : > { %v765_v35 = vmul.f32 0.5, %v764_v61  ;;  %v700_v62 = vsub.f32 1.5, %v699_v26  ;;  %v635_v22 = vmul.f32 %v1874_v8, %v634_v38  ;;  %v816_v53 = vadd.f32 %v815_v13, %v814_v25 }
 0x166   : > { %v733_v14 = vsub.f32 1.5, %v732_v7  ;;  %v668_v32 = vmul.f32 %v1879_v6, %v667_v12  ;;  %v798_v52 = vmul.f32 0.5, %v797_v21  ;;  %v566_v23 = vsel %vm1922_vm8, %v1867_v45, %v562_v9 }
 0x167   : > { %v766_v17 = vsub.f32 1.5, %v765_v35  ;;  %v701_v48 = vmul.f32 %v1885_v37, %v700_v62  ;;  %v606_v40 = vsel %vm1932_vm12, %v1870_v39, %v602_v5  ;;  %vm769_vm15 = vweird.f32 %v1895_v33 }
 0x168   : > { %v734_v57 = vmul.f32 %v1890_v41, %v733_v14  ;;  %v639_v45 = vsel %vm1948_vm14, %v1874_v8, %v635_v22  ;;  %v799_v18 = vsub.f32 1.5, %v798_v52  ;;  %v817_v42 = vmul.f32 %v816_v53, %v1734_v24  ;;  %vm770_vm7 = vmor %vm768_vm3, %vm769_vm15 }
 0x169   : > { %v767_v50 = vmul.f32 %v1895_v33, %v766_v17  ;;  %v672_v29 = vsel %vm1959_vm0, %v1879_v6, %v668_v32  ;;  %vm802_vm4 = vweird.f32 %v1904_v54  ;;  %v705_v49 = vsel %vm1972_vm1, %v1885_v37, %v701_v48 }
 0x16a   : > { %v800_v46 = vmul.f32 %v1904_v54, %v799_v18  ;;  %vm801_vm6 = vweird.f32 %v1865_v36  ;;  %v1991_v11 = vsub.f32 %v1852_v55, %v817_v42  ;;  %v567_v56 = vmul.f32 %v566_v23, %v1793_v4 }
 0x16b   : > { %v607_v3 = vmul.f32 %v606_v40, %v1796_v47  ;;  %v640_v37 = vmul.f32 %v639_v45, %v1799_v2  ;;  %v738_v30 = vsel %vm1984_vm5, %v1890_v41, %v734_v57  ;;  %v673_v36 = vmul.f32 %v672_v29, %v1802_v10  ;;  %vm803_vm8 = vmor %vm801_vm6, %vm802_vm4 }
 0x16c   : > { %v771_v1 = vsel %vm770_vm7, %v1895_v33, %v767_v50  ;;  %v819_v4 = vmul.f32 %v1991_v11, %v1991_v11  ;;  %v706_v47 = vmul.f32 %v705_v49, %v1805_v34  ;;  %v804_v2 = vsel %vm803_vm8, %v1904_v54, %v800_v46 }
 0x16d   : > { %v739_v55 = vmul.f32 %v738_v30, %v1808_v63  ;;  %v572_v41 = vmul.f32 %v570_v58, %v567_v56  ;;  %v608_v59 = vmul.f32 %v607_v3, %v570_v58  ;;  %v641_v20 = vmul.f32 %v640_v37, %v570_v58 }
 0x16e   : > { %v820_v19 = vrot.slane %v819_v4, 4  ;;  %v772_v0 = vmul.f32 %v771_v1, %v1811_v31  ;;  %v674_v10 = vmul.f32 %v673_v36, %v570_v58  ;;  %v805_v33 = vmul.f32 %v804_v2, %v1814_v43 }
 0x16f   : > { %v707_v61 = vmul.f32 %v706_v47, %v570_v58  ;;  %v740_v26 = vmul.f32 %v739_v55, %v570_v58  ;;  %v577_v44 = vadd.f32 %v575_v27, %v572_v41  ;;  %v609_v54 = vadd.f32 %v608_v59, %v575_v27 }
 0x170   : > { %v821_v28 = vadd.f32 %v820_v19, %v819_v4  ;;  %v773_v34 = vmul.f32 %v772_v0, %v570_v58  ;;  %v642_v7 = vadd.f32 %v641_v20, %v575_v27  ;;  %v806_v63 = vmul.f32 %v805_v33, %v570_v58 }
 0x171   : > { %v675_v35 = vadd.f32 %v674_v10, %v575_v27  ;;  %578 = vst [vmem:[%s2011_s23] sm:$0xff] %v577_v44  ;;  %v708_v31 = vadd.f32 %v707_v61, %v575_v27  ;;  %v741_v60 = vadd.f32 %v740_v26, %v575_v27 }
 0x172   : > { %v822_v25 = vrot.slane %v821_v28, 2  ;;  %956 = vst [vmem:[%s2011_s23 + $0x8] sm:$0xff] %v609_v54  ;;  %v774_v12 = vadd.f32 %v773_v34, %v575_v27  ;;  %v807_v13 = vadd.f32 %v806_v63, %v575_v27 }
 0x173   : > { %957 = vst [vmem:[%s2011_s23 + $0x10] sm:$0xff] %v642_v7 }
 0x174   : > { %v823_v38 = vadd.f32 %v822_v25, %v821_v28  ;;  %958 = vst [vmem:[%s2011_s23 + $0x18] sm:$0xff] %v675_v35 }
 0x175   : > { %959 = vst [vmem:[%s2011_s23 + $0x20] sm:$0xff] %v708_v31 }
 0x176   : > { %v824_v43 = vrot.slane %v823_v38, 1  ;;  %960 = vst [vmem:[%s2011_s23 + $0x28] sm:$0xff] %v741_v60 }
 0x177   : > { %961 = vst [vmem:[%s2011_s23 + $0x30] sm:$0xff] %v774_v12 }
 0x178   : > { %v825_v62 = vadd.f32 %v824_v43, %v823_v38  ;;  %962 = vst [vmem:[%s2011_s23 + $0x38] sm:$0xff] %v807_v13 }
 0x17a   : > { %v826_v9 = vmul.f32 %v825_v62, %v1734_v24 }
 0x17c   : > { %v827_v5 = vadd.f32 1e-05, %v826_v9 }
 0x17e   : > { %1139 = vrsqrt.f32 %v827_v5  ;;  %vm834_vm10 = vweird.f32 %v827_v5 }
 0x184   : > { %v1140_v14 = vpop.eup %1139 }
 0x185   : > { %v829_v22 = vmul.f32 %v1140_v14, %v827_v5  ;;  %vm835_vm9 = vweird.f32 %v1140_v14 }
 0x186   : > { %vm836_vm11 = vmor %vm834_vm10, %vm835_vm9 }
 0x187   : > { %v830_v17 = vmul.f32 %v1140_v14, %v829_v22 }
 0x189   : > { %v831_v21 = vmul.f32 0.5, %v830_v17 }
 0x18b   : > { %v832_v15 = vsub.f32 1.5, %v831_v21 }
 0x18d   : > { %v833_v32 = vmul.f32 %v1140_v14, %v832_v15 }
 0x18f   : > { %v837_v24 = vsel %vm836_vm11, %v1140_v14, %v833_v32 }
 0x190   : > { %v838_v51 = vmul.f32 %v837_v24, %v1991_v11 }
 0x192   : > { %v839_v48 = vmul.f32 %v838_v51, %v570_v58 }
 0x194   : > { %v840_v52 = vadd.f32 %v839_v48, %v575_v27 }
 0x196   : > { %963 = vst [vmem:[%s2011_s23 + $0x40] sm:$0xff] %v840_v52 }
 0x197   : > { %1228 = shalt.err (!%p1225_p8)
}
 0x198   : > { %s1321_s6 = smov 128   ;;  %s1322_s7 = smov 256  }
 0x199   : > { %s1323_s8 = smov 8  }
 0x19a   : > { %976 = dma.vmem_to_hbm [thread:$0]  (%p1391_p11), %s856_s19, 1152, %s858_s25, %s844_s13, %s1321_s6, %s1322_s7, %s1323_s8  }
 0x19b PF: > { %s872_s24 = sand.u32 1, %s1259_s9   ;;  %p2101_p9 = scmp.ge.s32.totalorder %s1271_s12, 2 }
 0x19c   : > { %s873_s20 = scalar_lea.sflag [#allocation4], %s872_s24 }
 0x19d   : > { %p987_p10 = pnand %p2101_p9, %p1395_p12 }
 0x19f   : > { %p988_p1 = pneg %p987_p10 }
 0x1a1   : > { %1254 = dma.done.wait (%p988_p1), %s873_s20, 1152  }
 0x1a2   : > { %1256 = vsyncadd (%p988_p1), %s873_s20, 4294966144  ;;  %p16_p2 = scmp.ge.s32.totalorder %s1364_s15, 4   ;;  %s2102_s9 = smov %s1263_s10 }
 0x1a3   : > { %s2103_s10 = smov %s1267_s11  ;;  %s2104_s11 = smov %s1376_s18 }
 0x1a4   : > { %s2105_s12 = smov %s1364_s15  ;;  %18 = sbr.rel (!%p16_p2) target bundleno = 6 (0x6), region = 93 }
 0x1a9   :  { %879 = vsyncpa [#allocation3], 1 }
 0x1aa   :  { %881 = vsyncpa [#allocation3 + $0x1], 1 }
 0x1ab   :  { %882 = vsyncpa [#allocation6], 1 }
 0x1ac   :  { %883 = vsyncpa [#allocation4], 1 }
 0x1ad   :  { %885 = vsyncpa [#allocation4 + $0x1], 1 }

</bundles_post_ra>
